<compile_context>
chip_gen: v6e
topology: v6e:2x2x1
jax: 0.10.0
libtpu: 0.0.40
codegen_flags: <defaults>
</compile_context>

<pallas_src>
import functools
import math

import jax
import jax.numpy as jnp
from jax.experimental import pallas as pl
from jax.experimental.pallas import tpu as pltpu

_LN_EPS = 1e-5
_VMEM_LIMIT = 32 * 1024 * 1024  # safe on v5e/v6e/v7x (under 64 MiB physical on v7x)


# ----------------------------------------------------------------------------
# Small helpers
# ----------------------------------------------------------------------------
def _row_tile(m):
    """Largest row tile (multiple of 8) that divides m; fall back to full m."""
    for t in (512, 256, 128, 64, 32, 16, 8):
        if t <= m and m % t == 0:
            return t
    return m


def _row_spec(tm, cols):
    return pl.BlockSpec((tm, cols), lambda i: (i, 0))


def _const_spec(rows, cols):
    return pl.BlockSpec((rows, cols), lambda i: (0, 0))


def _cparams(grid_len=1):
    return pltpu.CompilerParams(
        dimension_semantics=("parallel",) * grid_len,
        vmem_limit_bytes=_VMEM_LIMIT)


def _layernorm(y, gamma, beta):
    mu = jnp.mean(y, axis=-1, keepdims=True)
    var = jnp.mean(jnp.square(y - mu), axis=-1, keepdims=True)
    return (y - mu) * jax.lax.rsqrt(var + _LN_EPS) * gamma + beta


# ----------------------------------------------------------------------------
# Fused input embedding:
#   state @ Ws + bs + gathered(action_emb) + gathered(timestep_emb)
#   + reward * Wr + br       (Linear(1, E) as a broadcasted row)
# ----------------------------------------------------------------------------
def _embed_kernel(s_ref, ae_ref, te_ref, r_ref, ws_ref, bs_ref, wr_ref, br_ref,
                  o_ref):
    s_emb = jnp.dot(s_ref[...], ws_ref[...],
                    preferred_element_type=jnp.float32) + bs_ref[...]
    r_emb = r_ref[...] * wr_ref[...] + br_ref[...]
    o_ref[...] = s_emb + ae_ref[...] + te_ref[...] + r_emb


def embed_inputs(states2, act_emb, t_emb, r2, p):
    M, Sd = states2.shape
    E = act_emb.shape[1]
    tm = _row_tile(M)
    return pl.pallas_call(
        _embed_kernel,
        grid=(M // tm,),
        in_specs=[_row_spec(tm, Sd), _row_spec(tm, E), _row_spec(tm, E),
                  _row_spec(tm, 1),
                  _const_spec(Sd, E), _const_spec(1, E),
                  _const_spec(1, E), _const_spec(1, E)],
        out_specs=_row_spec(tm, E),
        out_shape=jax.ShapeDtypeStruct((M, E), jnp.float32),
        compiler_params=_cparams(1),
        cost_estimate=pl.CostEstimate(
            flops=2 * M * Sd * E + 5 * M * E,
            transcendentals=0,
            bytes_accessed=4 * (M * Sd + 4 * M * E + M + Sd * E + 3 * E)),
    )(states2, act_emb, t_emb, r2, p["w_t"], p["b"], p["wr"], p["br"])


# ----------------------------------------------------------------------------
# Fused self-attention block: LN(x + OutProj(MHA(x, x, x)))
# One grid step per batch element; all heads handled inside the kernel.
# ----------------------------------------------------------------------------
def _self_attn_block_kernel(x_ref, w_in_ref, b_in_ref, w_out_ref, b_out_ref,
                            g_ref, bln_ref, o_ref, *, n_heads, scale):
    x = x_ref[...]                                            # (S, E)
    S, E = x.shape
    dh = E // n_heads
    qkv = jnp.dot(x, w_in_ref[...],
                  preferred_element_type=jnp.float32) + b_in_ref[...]  # (S, 3E)
    w_out = w_out_ref[...]                                    # (E, E)
    acc = jnp.zeros((S, E), jnp.float32)
    for h in range(n_heads):
        q = qkv[:, h * dh:(h + 1) * dh]
        k = qkv[:, E + h * dh:E + (h + 1) * dh]
        v = qkv[:, 2 * E + h * dh:2 * E + (h + 1) * dh]
        # q @ k^T without materializing a transpose (contract last dims).
        s = jax.lax.dot_general(q, k, (((1,), (1,)), ((), ())),
                                preferred_element_type=jnp.float32) * scale
        s = s - jnp.max(s, axis=-1, keepdims=True)
        p = jnp.exp(s)
        p = p * pl.reciprocal(jnp.sum(p, axis=-1, keepdims=True), approx=True)
        oh = jnp.dot(p, v, preferred_element_type=jnp.float32)  # (S, dh)
        # Out-projection accumulated per-head: avoids concat of head outputs.
        acc = acc + jnp.dot(oh, w_out[h * dh:(h + 1) * dh, :],
                            preferred_element_type=jnp.float32)
    y = x + acc + b_out_ref[...]
    o_ref[...] = _layernorm(y, g_ref[...], bln_ref[...])


def self_attn_block(x, p, ln, B, S, n_heads):
    M, E = x.shape
    scale = 1.0 / math.sqrt(E // n_heads)
    return pl.pallas_call(
        functools.partial(_self_attn_block_kernel, n_heads=n_heads, scale=scale),
        grid=(B,),
        in_specs=[_row_spec(S, E),
                  _const_spec(E, 3 * E), _const_spec(1, 3 * E),
                  _const_spec(E, E), _const_spec(1, E),
                  _const_spec(1, E), _const_spec(1, E)],
        out_specs=_row_spec(S, E),
        out_shape=jax.ShapeDtypeStruct((M, E), jnp.float32),
        compiler_params=_cparams(1),
        cost_estimate=pl.CostEstimate(
            flops=8 * M * E * E + 4 * M * S * E,
            transcendentals=M * S * n_heads,
            bytes_accessed=4 * (2 * M * E + 4 * E * E + 6 * E)),
    )(x, p["w_in_t"], p["b_in"], p["w_out_t"], p["b_out"], ln["g"], ln["b"])


# ----------------------------------------------------------------------------
# Fused cross-attention block: LN(xq + OutProj(MHA(xq, mem, mem)))
# ----------------------------------------------------------------------------
def _cross_attn_block_kernel(xq_ref, xkv_ref, wq_ref, bq_ref, wkv_ref, bkv_ref,
                             w_out_ref, b_out_ref, g_ref, bln_ref, o_ref,
                             *, n_heads, scale):
    xq = xq_ref[...]                                          # (S, E)
    xkv = xkv_ref[...]                                        # (S, E)
    S, E = xq.shape
    dh = E // n_heads
    q_all = jnp.dot(xq, wq_ref[...],
                    preferred_element_type=jnp.float32) + bq_ref[...]   # (S, E)
    kv = jnp.dot(xkv, wkv_ref[...],
                 preferred_element_type=jnp.float32) + bkv_ref[...]     # (S, 2E)
    w_out = w_out_ref[...]
    acc = jnp.zeros((S, E), jnp.float32)
    for h in range(n_heads):
        q = q_all[:, h * dh:(h + 1) * dh]
        k = kv[:, h * dh:(h + 1) * dh]
        v = kv[:, E + h * dh:E + (h + 1) * dh]
        s = jax.lax.dot_general(q, k, (((1,), (1,)), ((), ())),
                                preferred_element_type=jnp.float32) * scale
        s = s - jnp.max(s, axis=-1, keepdims=True)
        p = jnp.exp(s)
        p = p * pl.reciprocal(jnp.sum(p, axis=-1, keepdims=True), approx=True)
        oh = jnp.dot(p, v, preferred_element_type=jnp.float32)
        acc = acc + jnp.dot(oh, w_out[h * dh:(h + 1) * dh, :],
                            preferred_element_type=jnp.float32)
    y = xq + acc + b_out_ref[...]
    o_ref[...] = _layernorm(y, g_ref[...], bln_ref[...])


def cross_attn_block(xq, xkv, p, ln, B, S, n_heads):
    M, E = xq.shape
    scale = 1.0 / math.sqrt(E // n_heads)
    return pl.pallas_call(
        functools.partial(_cross_attn_block_kernel, n_heads=n_heads, scale=scale),
        grid=(B,),
        in_specs=[_row_spec(S, E), _row_spec(S, E),
                  _const_spec(E, E), _const_spec(1, E),
                  _const_spec(E, 2 * E), _const_spec(1, 2 * E),
                  _const_spec(E, E), _const_spec(1, E),
                  _const_spec(1, E), _const_spec(1, E)],
        out_specs=_row_spec(S, E),
        out_shape=jax.ShapeDtypeStruct((M, E), jnp.float32),
        compiler_params=_cparams(1),
        cost_estimate=pl.CostEstimate(
            flops=8 * M * E * E + 4 * M * S * E,
            transcendentals=M * S * n_heads,
            bytes_accessed=4 * (3 * M * E + 4 * E * E + 7 * E)),
    )(xq, xkv, p["wq_t"], p["bq"], p["wkv_t"], p["bkv"],
      p["w_out_t"], p["b_out"], ln["g"], ln["b"])


# ----------------------------------------------------------------------------
# Fused feed-forward block: LN(x + W2 @ relu(W1 @ x))
# ----------------------------------------------------------------------------
def _ffn_block_kernel(x_ref, w1_ref, b1_ref, w2_ref, b2_ref, g_ref, bln_ref,
                      o_ref):
    x = x_ref[...]
    h = jnp.maximum(
        jnp.dot(x, w1_ref[...], preferred_element_type=jnp.float32) + b1_ref[...],
        0.0)
    y = x + jnp.dot(h, w2_ref[...],
                    preferred_element_type=jnp.float32) + b2_ref[...]
    o_ref[...] = _layernorm(y, g_ref[...], bln_ref[...])


def ffn_block(x, p, ln):
    M, E = x.shape
    F = p["w1_t"].shape[1]
    tm = _row_tile(M)
    return pl.pallas_call(
        _ffn_block_kernel,
        grid=(M // tm,),
        in_specs=[_row_spec(tm, E),
                  _const_spec(E, F), _const_spec(1, F),
                  _const_spec(F, E), _const_spec(1, E),
                  _const_spec(1, E), _const_spec(1, E)],
        out_specs=_row_spec(tm, E),
        out_shape=jax.ShapeDtypeStruct((M, E), jnp.float32),
        compiler_params=_cparams(1),
        cost_estimate=pl.CostEstimate(
            flops=4 * M * E * F,
            transcendentals=0,
            bytes_accessed=4 * (2 * M * E + 2 * E * F + F + 3 * E)),
    )(x, p["w1_t"], p["b1"], p["w2_t"], p["b2"], ln["g"], ln["b"])


# ----------------------------------------------------------------------------
# LayerNorm-only kernel (final encoder/decoder norms — no zeros array needed)
# ----------------------------------------------------------------------------
def _ln_kernel(x_ref, g_ref, b_ref, o_ref):
    o_ref[...] = _layernorm(x_ref[...], g_ref[...], b_ref[...])


def layernorm(x, ln):
    M, E = x.shape
    tm = _row_tile(M)
    return pl.pallas_call(
        _ln_kernel,
        grid=(M // tm,),
        in_specs=[_row_spec(tm, E), _const_spec(1, E), _const_spec(1, E)],
        out_specs=_row_spec(tm, E),
        out_shape=jax.ShapeDtypeStruct((M, E), jnp.float32),
        compiler_params=_cparams(1),
    )(x, ln["g"], ln["b"])


# ----------------------------------------------------------------------------
# Fused action/value heads: one lane-dense (M, 128) padded output slab
# ----------------------------------------------------------------------------
def _heads_kernel(x_ref, w_ref, b_ref, o_ref):
    o_ref[...] = jnp.dot(x_ref[...], w_ref[...],
                         preferred_element_type=jnp.float32) + b_ref[...]


def fused_heads(x, w_t, b):
    M, E = x.shape
    P = w_t.shape[1]
    tm = _row_tile(M)
    return pl.pallas_call(
        _heads_kernel,
        grid=(M // tm,),
        in_specs=[_row_spec(tm, E), _const_spec(E, P), _const_spec(1, P)],
        out_specs=_row_spec(tm, P),
        out_shape=jax.ShapeDtypeStruct((M, P), jnp.float32),
        compiler_params=_cparams(1),
        cost_estimate=pl.CostEstimate(
            flops=2 * M * E * P,
            transcendentals=0,
            bytes_accessed=4 * (M * E + E * P + P + M * P)),
    )(x, w_t, b)


# ----------------------------------------------------------------------------
# Full Decision Transformer forward (post-norm encoder/decoder, eval mode)
# ----------------------------------------------------------------------------
def decision_transformer_forward(params, states, actions, rewards, timesteps,
                                 *, n_heads, action_dim):
    B, S, state_dim = states.shape
    M = B * S

    states2 = states.reshape(M, state_dim).astype(jnp.float32)
    r2 = rewards.reshape(M, 1).astype(jnp.float32)
    # Data-dependent embedding row gathers (XLA gather feeding the fused kernel).
    act_emb = jnp.take(params["action_embedding"], actions.reshape(M), axis=0)
    t_emb = jnp.take(params["timestep_embedding"], timesteps.reshape(M), axis=0)

    x = embed_inputs(states2, act_emb, t_emb, r2, params["embed"])     # (M, E)

    # --- encoder (src = input embedding) ---
    src = x
    for lp in params["encoder"]:
        src = self_attn_block(src, lp["self_attn"], lp["norm1"], B, S, n_heads)
        src = ffn_block(src, lp["ffn"], lp["norm2"])
    memory = layernorm(src, params["encoder_norm"])

    # --- decoder (tgt = input embedding, cross-attends to memory) ---
    tgt = x
    for lp in params["decoder"]:
        tgt = self_attn_block(tgt, lp["self_attn"], lp["norm1"], B, S, n_heads)
        tgt = cross_attn_block(tgt, memory, lp["cross_attn"], lp["norm2"],
                               B, S, n_heads)
        tgt = ffn_block(tgt, lp["ffn"], lp["norm3"])
    out = layernorm(tgt, params["decoder_norm"])

    heads_out = fused_heads(out, params["head_w_t"], params["head_b"])  # (M, 128)
    action_logits = heads_out[:, :action_dim].reshape(B, S, action_dim)
    values = heads_out[:, action_dim:action_dim + 1].reshape(B, S, 1)
    return action_logits, values


# ----------------------------------------------------------------------------
# Deterministic parameter init (shapes per DecisionTransformer.__init__),
# stored pre-transposed / pre-fused so no wrapper-side transposes per forward.
# ----------------------------------------------------------------------------
def init_params(key, state_dim, action_dim, max_length, n_layers, n_heads,
                embed_dim):
    del n_heads  # head count only affects runtime split, not param shapes
    keys = iter(jax.random.split(key, 1024))
    E = embed_dim

    def rnd(shape):
        return jax.random.normal(next(keys), shape, jnp.float32) * 0.05

    def ln():
        return {"g": jnp.ones((1, E), jnp.float32),
                "b": jnp.zeros((1, E), jnp.float32)}

    def self_attn():
        # (in, out)-layout QKV packed weight (x @ w_in_t -> [q|k|v]) + out proj.
        return {"w_in_t": rnd((E, 3 * E)), "b_in": rnd((1, 3 * E)),
                "w_out_t": rnd((E, E)), "b_out": rnd((1, E))}

    def cross_attn():
        # Q-proj applied to tgt; packed KV-proj applied to memory.
        return {"wq_t": rnd((E, E)), "bq": rnd((1, E)),
                "wkv_t": rnd((E, 2 * E)), "bkv": rnd((1, 2 * E)),
                "w_out_t": rnd((E, E)), "b_out": rnd((1, E))}

    def ffn_p():
        return {"w1_t": rnd((E, 4 * E)), "b1": rnd((1, 4 * E)),
                "w2_t": rnd((4 * E, E)), "b2": rnd((1, E))}

    # Fused, lane-padded output heads: cols [0:action_dim]=action, [action_dim]=value.
    head_pad = max(128, ((action_dim + 1 + 127) // 128) * 128)
    head_w = jnp.zeros((E, head_pad), jnp.float32)
    head_w = head_w.at[:, :action_dim].set(rnd((E, action_dim)))
    head_w = head_w.at[:, action_dim:action_dim + 1].set(rnd((E, 1)))
    head_b = jnp.zeros((1, head_pad), jnp.float32)
    head_b = head_b.at[:, :action_dim + 1].set(rnd((1, action_dim + 1)))

    return {
        "embed": {"w_t": rnd((state_dim, E)), "b": rnd((1, E)),
                  "wr": rnd((1, E)), "br": rnd((1, E))},
        "action_embedding": rnd((action_dim, E)),
        "timestep_embedding": rnd((max_length, E)),
        "encoder": [
            {"self_attn": self_attn(), "ffn": ffn_p(),
             "norm1": ln(), "norm2": ln()}
            for _ in range(n_layers)],
        "encoder_norm": ln(),
        "decoder": [
            {"self_attn": self_attn(), "cross_attn": cross_attn(),
             "ffn": ffn_p(), "norm1": ln(), "norm2": ln(), "norm3": ln()}
            for _ in range(n_layers)],
        "decoder_norm": ln(),
        "head_w_t": head_w,
        "head_b": head_b,
    }


if __name__ == "__main__":
    B, S = 2, 8
    state_dim, action_dim, max_length = 16, 6, 16
    n_layers, n_heads, embed_dim = 2, 4, 32

    key = jax.random.PRNGKey(0)
    kp, ks, ka, kr = jax.random.split(key, 4)
    params = init_params(kp, state_dim, action_dim, max_length,
                         n_layers, n_heads, embed_dim)

    states = jax.random.normal(ks, (B, S, state_dim), jnp.float32)
    actions = jax.random.randint(ka, (B, S), 0, action_dim, dtype=jnp.int32)
    rewards = jax.random.normal(kr, (B, S), jnp.float32)
    timesteps = jnp.broadcast_to(jnp.arange(S, dtype=jnp.int32), (B, S))

    fwd = jax.jit(functools.partial(decision_transformer_forward,
                                    n_heads=n_heads, action_dim=action_dim))
    action_logits, values = fwd(params, states, actions, rewards, timesteps)
    jax.block_until_ready((action_logits, values))

    assert action_logits.shape == (B, S, action_dim)
    assert values.shape == (B, S, 1)
    assert jnp.all(jnp.isfinite(action_logits)) and jnp.all(jnp.isfinite(values))
    print("KERNEL_OK")
</pallas_src>

<mosaic_0001>
module attributes {stable_mosaic.version = 11 : i64} {
  func.func @_embed_kernel(%arg0: i32, %arg1: memref<16x16xf32, #tpu.memory_space<vmem>>, %arg2: memref<16x32xf32, #tpu.memory_space<vmem>>, %arg3: memref<16x32xf32, #tpu.memory_space<vmem>>, %arg4: memref<16x1xf32, #tpu.memory_space<vmem>>, %arg5: memref<16x32xf32, #tpu.memory_space<vmem>>, %arg6: memref<1x32xf32, #tpu.memory_space<vmem>>, %arg7: memref<1x32xf32, #tpu.memory_space<vmem>>, %arg8: memref<1x32xf32, #tpu.memory_space<vmem>>, %arg9: memref<16x32xf32, #tpu.memory_space<vmem>>) attributes {dimension_semantics = [#tpu.dimension_semantics<parallel>], iteration_bounds = array<i64: 1>, scalar_prefetch = 0 : i64, scratch_operands = 0 : i64, tpu.core_type = #tpu.core_type<tc>, window_params = [{transform_indices = @transform_0, window_bounds = array<i64: 16, 16>}, {transform_indices = @transform_1, window_bounds = array<i64: 16, 32>}, {transform_indices = @transform_2, window_bounds = array<i64: 16, 32>}, {transform_indices = @transform_3, window_bounds = array<i64: 16, 1>}, {pipeline_mode = #tpu.pipeline_mode<synchronous>, transform_indices = @transform_4, window_bounds = array<i64: 16, 32>}, {pipeline_mode = #tpu.pipeline_mode<synchronous>, transform_indices = @transform_5, window_bounds = array<i64: 1, 32>}, {pipeline_mode = #tpu.pipeline_mode<synchronous>, transform_indices = @transform_6, window_bounds = array<i64: 1, 32>}, {pipeline_mode = #tpu.pipeline_mode<synchronous>, transform_indices = @transform_7, window_bounds = array<i64: 1, 32>}, {transform_indices = @transform_8, window_bounds = array<i64: 16, 32>}]} {
    %c0 = arith.constant 0 : index
    %c0_0 = arith.constant 0 : index
    %0 = vector.load %arg1[%c0, %c0_0] : memref<16x16xf32, #tpu.memory_space<vmem>>, vector<16x16xf32>
    %c0_1 = arith.constant 0 : index
    %c0_2 = arith.constant 0 : index
    %1 = vector.load %arg5[%c0_1, %c0_2] : memref<16x32xf32, #tpu.memory_space<vmem>>, vector<16x32xf32>
    %cst = arith.constant dense<0.000000e+00> : vector<16x32xf32>
    %2 = tpu.matmul %0, %1, %cst {dimension_numbers = #tpu.dot_dimension_numbers<[1], [0], [0], [1], [0, 0, 1, 1], [], []>} : vector<16x16xf32>, vector<16x32xf32>, vector<16x32xf32> -> vector<16x32xf32>
    %c0_3 = arith.constant 0 : index
    %c0_4 = arith.constant 0 : index
    %3 = vector.load %arg6[%c0_3, %c0_4] : memref<1x32xf32, #tpu.memory_space<vmem>>, vector<1x32xf32>
    %4 = vector.broadcast %3 : vector<1x32xf32> to vector<16x32xf32>
    %5 = arith.addf %2, %4 : vector<16x32xf32>
    %c0_5 = arith.constant 0 : index
    %c0_6 = arith.constant 0 : index
    %6 = vector.load %arg4[%c0_5, %c0_6] : memref<16x1xf32, #tpu.memory_space<vmem>>, vector<16x1xf32>
    %c0_7 = arith.constant 0 : index
    %c0_8 = arith.constant 0 : index
    %7 = vector.load %arg7[%c0_7, %c0_8] : memref<1x32xf32, #tpu.memory_space<vmem>>, vector<1x32xf32>
    %8 = vector.broadcast %6 : vector<16x1xf32> to vector<16x32xf32>
    %9 = vector.broadcast %7 : vector<1x32xf32> to vector<16x32xf32>
    %10 = arith.mulf %8, %9 : vector<16x32xf32>
    %c0_9 = arith.constant 0 : index
    %c0_10 = arith.constant 0 : index
    %11 = vector.load %arg8[%c0_9, %c0_10] : memref<1x32xf32, #tpu.memory_space<vmem>>, vector<1x32xf32>
    %12 = vector.broadcast %11 : vector<1x32xf32> to vector<16x32xf32>
    %13 = arith.addf %10, %12 : vector<16x32xf32>
    %c0_11 = arith.constant 0 : index
    %c0_12 = arith.constant 0 : index
    %14 = vector.load %arg2[%c0_11, %c0_12] : memref<16x32xf32, #tpu.memory_space<vmem>>, vector<16x32xf32>
    %15 = arith.addf %5, %14 : vector<16x32xf32>
    %c0_13 = arith.constant 0 : index
    %c0_14 = arith.constant 0 : index
    %16 = vector.load %arg3[%c0_13, %c0_14] : memref<16x32xf32, #tpu.memory_space<vmem>>, vector<16x32xf32>
    %17 = arith.addf %15, %16 : vector<16x32xf32>
    %18 = arith.addf %17, %13 : vector<16x32xf32>
    %c0_15 = arith.constant 0 : index
    %c0_16 = arith.constant 0 : index
    %19 = vector.load %arg9[%c0_15, %c0_16] : memref<16x32xf32, #tpu.memory_space<vmem>>, vector<16x32xf32>
    tpu.vector_store %arg9[%c0_15, %c0_16], %18 {strides = array<i32>} : memref<16x32xf32, #tpu.memory_space<vmem>>, vector<16x32xf32>,
    return
  }
  func.func @transform_0(%arg0: i32) -> (i32, i32) {
    %c0_i32 = arith.constant 0 : i32
    %c0_i32_0 = arith.constant 0 : i32
    return %arg0, %c0_i32 : i32, i32
  }
  func.func @transform_1(%arg0: i32) -> (i32, i32) {
    %c0_i32 = arith.constant 0 : i32
    %c0_i32_0 = arith.constant 0 : i32
    return %arg0, %c0_i32 : i32, i32
  }
  func.func @transform_2(%arg0: i32) -> (i32, i32) {
    %c0_i32 = arith.constant 0 : i32
    %c0_i32_0 = arith.constant 0 : i32
    return %arg0, %c0_i32 : i32, i32
  }
  func.func @transform_3(%arg0: i32) -> (i32, i32) {
    %c0_i32 = arith.constant 0 : i32
    %c0_i32_0 = arith.constant 0 : i32
    return %arg0, %c0_i32 : i32, i32
  }
  func.func @transform_4(%arg0: i32) -> (i32, i32) {
    %c0_i32 = arith.constant 0 : i32
    %c0_i32_0 = arith.constant 0 : i32
    %c0_i32_1 = arith.constant 0 : i32
    return %c0_i32, %c0_i32_0 : i32, i32
  }
  func.func @transform_5(%arg0: i32) -> (i32, i32) {
    %c0_i32 = arith.constant 0 : i32
    %c0_i32_0 = arith.constant 0 : i32
    %c0_i32_1 = arith.constant 0 : i32
    return %c0_i32, %c0_i32_0 : i32, i32
  }
  func.func @transform_6(%arg0: i32) -> (i32, i32) {
    %c0_i32 = arith.constant 0 : i32
    %c0_i32_0 = arith.constant 0 : i32
    %c0_i32_1 = arith.constant 0 : i32
    return %c0_i32, %c0_i32_0 : i32, i32
  }
  func.func @transform_7(%arg0: i32) -> (i32, i32) {
    %c0_i32 = arith.constant 0 : i32
    %c0_i32_0 = arith.constant 0 : i32
    %c0_i32_1 = arith.constant 0 : i32
    return %c0_i32, %c0_i32_0 : i32, i32
  }
  func.func @transform_8(%arg0: i32) -> (i32, i32) {
    %c0_i32 = arith.constant 0 : i32
    %c0_i32_0 = arith.constant 0 : i32
    return %arg0, %c0_i32 : i32, i32
  }
}

module attributes {stable_mosaic.version = 11 : i64} {
  func.func @_ffn_block_kernel(%arg0: i32, %arg1: memref<16x32xf32, #tpu.memory_space<vmem>>, %arg2: memref<32x128xf32, #tpu.memory_space<vmem>>, %arg3: memref<1x128xf32, #tpu.memory_space<vmem>>, %arg4: memref<128x32xf32, #tpu.memory_space<vmem>>, %arg5: memref<1x32xf32, #tpu.memory_space<vmem>>, %arg6: memref<1x32xf32, #tpu.memory_space<vmem>>, %arg7: memref<1x32xf32, #tpu.memory_space<vmem>>, %arg8: memref<16x32xf32, #tpu.memory_space<vmem>>) attributes {dimension_semantics = [#tpu.dimension_semantics<parallel>], iteration_bounds = array<i64: 1>, scalar_prefetch = 0 : i64, scratch_operands = 0 : i64, tpu.core_type = #tpu.core_type<tc>, window_params = [{transform_indices = @transform_0, window_bounds = array<i64: 16, 32>}, {pipeline_mode = #tpu.pipeline_mode<synchronous>, transform_indices = @transform_1, window_bounds = array<i64: 32, 128>}, {pipeline_mode = #tpu.pipeline_mode<synchronous>, transform_indices = @transform_2, window_bounds = array<i64: 1, 128>}, {pipeline_mode = #tpu.pipeline_mode<synchronous>, transform_indices = @transform_3, window_bounds = array<i64: 128, 32>}, {pipeline_mode = #tpu.pipeline_mode<synchronous>, transform_indices = @transform_4, window_bounds = array<i64: 1, 32>}, {pipeline_mode = #tpu.pipeline_mode<synchronous>, transform_indices = @transform_5, window_bounds = array<i64: 1, 32>}, {pipeline_mode = #tpu.pipeline_mode<synchronous>, transform_indices = @transform_6, window_bounds = array<i64: 1, 32>}, {transform_indices = @transform_7, window_bounds = array<i64: 16, 32>}]} {
    %c0 = arith.constant 0 : index
    %c0_0 = arith.constant 0 : index
    %0 = vector.load %arg1[%c0, %c0_0] : memref<16x32xf32, #tpu.memory_space<vmem>>, vector<16x32xf32>
    %c0_1 = arith.constant 0 : index
    %c0_2 = arith.constant 0 : index
    %1 = vector.load %arg2[%c0_1, %c0_2] : memref<32x128xf32, #tpu.memory_space<vmem>>, vector<32x128xf32>
    %cst = arith.constant dense<0.000000e+00> : vector<16x128xf32>
    %2 = tpu.matmul %0, %1, %cst {dimension_numbers = #tpu.dot_dimension_numbers<[1], [0], [0], [1], [0, 0, 1, 1], [], []>} : vector<16x32xf32>, vector<32x128xf32>, vector<16x128xf32> -> vector<16x128xf32>
    %c0_3 = arith.constant 0 : index
    %c0_4 = arith.constant 0 : index
    %3 = vector.load %arg3[%c0_3, %c0_4] : memref<1x128xf32, #tpu.memory_space<vmem>>, vector<1x128xf32>
    %4 = vector.broadcast %3 : vector<1x128xf32> to vector<16x128xf32>
    %5 = arith.addf %2, %4 : vector<16x128xf32>
    %cst_5 = arith.constant 0.000000e+00 : f32
    %6 = vector.broadcast %cst_5 : f32 to vector<16x128xf32>
    %7 = arith.maximumf %5, %6 : vector<16x128xf32>
    %c0_6 = arith.constant 0 : index
    %c0_7 = arith.constant 0 : index
    %8 = vector.load %arg4[%c0_6, %c0_7] : memref<128x32xf32, #tpu.memory_space<vmem>>, vector<128x32xf32>
    %cst_8 = arith.constant dense<0.000000e+00> : vector<16x32xf32>
    %9 = tpu.matmul %7, %8, %cst_8 {dimension_numbers = #tpu.dot_dimension_numbers<[1], [0], [0], [1], [0, 0, 1, 1], [], []>} : vector<16x128xf32>, vector<128x32xf32>, vector<16x32xf32> -> vector<16x32xf32>
    %10 = arith.addf %0, %9 : vector<16x32xf32>
    %c0_9 = arith.constant 0 : index
    %c0_10 = arith.constant 0 : index
    %11 = vector.load %arg5[%c0_9, %c0_10] : memref<1x32xf32, #tpu.memory_space<vmem>>, vector<1x32xf32>
    %12 = vector.broadcast %11 : vector<1x32xf32> to vector<16x32xf32>
    %13 = arith.addf %10, %12 : vector<16x32xf32>
    %c0_11 = arith.constant 0 : index
    %c0_12 = arith.constant 0 : index
    %14 = vector.load %arg6[%c0_11, %c0_12] : memref<1x32xf32, #tpu.memory_space<vmem>>, vector<1x32xf32>
    %c0_13 = arith.constant 0 : index
    %c0_14 = arith.constant 0 : index
    %15 = vector.load %arg7[%c0_13, %c0_14] : memref<1x32xf32, #tpu.memory_space<vmem>>, vector<1x32xf32>
    %cst_15 = arith.constant dense<0.000000e+00> : vector<16xf32>
    %16 = vector.multi_reduction <add>, %13, %cst_15 [1] : vector<16x32xf32> to vector<16xf32>
    %17 = vector.shape_cast %16 : vector<16xf32> to vector<16x1xf32>
    %cst_16 = arith.constant 3.200000e+01 : f32
    %18 = vector.broadcast %cst_16 : f32 to vector<16x1xf32>
    %19 = arith.divf %17, %18 : vector<16x1xf32>
    %20 = vector.broadcast %19 : vector<16x1xf32> to vector<16x32xf32>
    %21 = arith.subf %13, %20 : vector<16x32xf32>
    %22 = arith.mulf %21, %21 : vector<16x32xf32>
    %cst_17 = arith.constant dense<0.000000e+00> : vector<16xf32>
    %23 = vector.multi_reduction <add>, %22, %cst_17 [1] : vector<16x32xf32> to vector<16xf32>
    %24 = vector.shape_cast %23 : vector<16xf32> to vector<16x1xf32>
    %cst_18 = arith.constant 3.200000e+01 : f32
    %25 = vector.broadcast %cst_18 : f32 to vector<16x1xf32>
    %26 = arith.divf %24, %25 : vector<16x1xf32>
    %27 = vector.broadcast %19 : vector<16x1xf32> to vector<16x32xf32>
    %28 = arith.subf %13, %27 : vector<16x32xf32>
    %cst_19 = arith.constant 9.99999974E-6 : f32
    %29 = vector.broadcast %cst_19 : f32 to vector<16x1xf32>
    %30 = arith.addf %26, %29 : vector<16x1xf32>
    %31 = math.rsqrt %30 : vector<16x1xf32>
    %32 = vector.broadcast %31 : vector<16x1xf32> to vector<16x32xf32>
    %33 = arith.mulf %28, %32 : vector<16x32xf32>
    %34 = vector.broadcast %14 : vector<1x32xf32> to vector<16x32xf32>
    %35 = arith.mulf %33, %34 : vector<16x32xf32>
    %36 = vector.broadcast %15 : vector<1x32xf32> to vector<16x32xf32>
    %37 = arith.addf %35, %36 : vector<16x32xf32>
    %c0_20 = arith.constant 0 : index
    %c0_21 = arith.constant 0 : index
    %38 = vector.load %arg8[%c0_20, %c0_21] : memref<16x32xf32, #tpu.memory_space<vmem>>, vector<16x32xf32>
    tpu.vector_store %arg8[%c0_20, %c0_21], %37 {strides = array<i32>} : memref<16x32xf32, #tpu.memory_space<vmem>>, vector<16x32xf32>,
    return
  }
  func.func @transform_0(%arg0: i32) -> (i32, i32) {
    %c0_i32 = arith.constant 0 : i32
    %c0_i32_0 = arith.constant 0 : i32
    return %arg0, %c0_i32 : i32, i32
  }
  func.func @transform_1(%arg0: i32) -> (i32, i32) {
    %c0_i32 = arith.constant 0 : i32
    %c0_i32_0 = arith.constant 0 : i32
    %c0_i32_1 = arith.constant 0 : i32
    return %c0_i32, %c0_i32_0 : i32, i32
  }
  func.func @transform_2(%arg0: i32) -> (i32, i32) {
    %c0_i32 = arith.constant 0 : i32
    %c0_i32_0 = arith.constant 0 : i32
    %c0_i32_1 = arith.constant 0 : i32
    return %c0_i32, %c0_i32_0 : i32, i32
  }
  func.func @transform_3(%arg0: i32) -> (i32, i32) {
    %c0_i32 = arith.constant 0 : i32
    %c0_i32_0 = arith.constant 0 : i32
    %c0_i32_1 = arith.constant 0 : i32
    return %c0_i32, %c0_i32_0 : i32, i32
  }
  func.func @transform_4(%arg0: i32) -> (i32, i32) {
    %c0_i32 = arith.constant 0 : i32
    %c0_i32_0 = arith.constant 0 : i32
    %c0_i32_1 = arith.constant 0 : i32
    return %c0_i32, %c0_i32_0 : i32, i32
  }
  func.func @transform_5(%arg0: i32) -> (i32, i32) {
    %c0_i32 = arith.constant 0 : i32
    %c0_i32_0 = arith.constant 0 : i32
    %c0_i32_1 = arith.constant 0 : i32
    return %c0_i32, %c0_i32_0 : i32, i32
  }
  func.func @transform_6(%arg0: i32) -> (i32, i32) {
    %c0_i32 = arith.constant 0 : i32
    %c0_i32_0 = arith.constant 0 : i32
    %c0_i32_1 = arith.constant 0 : i32
    return %c0_i32, %c0_i32_0 : i32, i32
  }
  func.func @transform_7(%arg0: i32) -> (i32, i32) {
    %c0_i32 = arith.constant 0 : i32
    %c0_i32_0 = arith.constant 0 : i32
    return %arg0, %c0_i32 : i32, i32
  }
}

module attributes {stable_mosaic.version = 11 : i64} {
  func.func @_self_attn_block_kernel(%arg0: i32, %arg1: memref<8x32xf32, #tpu.memory_space<vmem>>, %arg2: memref<32x96xf32, #tpu.memory_space<vmem>>, %arg3: memref<1x96xf32, #tpu.memory_space<vmem>>, %arg4: memref<32x32xf32, #tpu.memory_space<vmem>>, %arg5: memref<1x32xf32, #tpu.memory_space<vmem>>, %arg6: memref<1x32xf32, #tpu.memory_space<vmem>>, %arg7: memref<1x32xf32, #tpu.memory_space<vmem>>, %arg8: memref<8x32xf32, #tpu.memory_space<vmem>>) attributes {dimension_semantics = [#tpu.dimension_semantics<parallel>], iteration_bounds = array<i64: 2>, scalar_prefetch = 0 : i64, scratch_operands = 0 : i64, tpu.core_type = #tpu.core_type<tc>, window_params = [{transform_indices = @transform_0, window_bounds = array<i64: 8, 32>}, {pipeline_mode = #tpu.pipeline_mode<synchronous>, transform_indices = @transform_1, window_bounds = array<i64: 32, 96>}, {pipeline_mode = #tpu.pipeline_mode<synchronous>, transform_indices = @transform_2, window_bounds = array<i64: 1, 96>}, {pipeline_mode = #tpu.pipeline_mode<synchronous>, transform_indices = @transform_3, window_bounds = array<i64: 32, 32>}, {pipeline_mode = #tpu.pipeline_mode<synchronous>, transform_indices = @transform_4, window_bounds = array<i64: 1, 32>}, {pipeline_mode = #tpu.pipeline_mode<synchronous>, transform_indices = @transform_5, window_bounds = array<i64: 1, 32>}, {pipeline_mode = #tpu.pipeline_mode<synchronous>, transform_indices = @transform_6, window_bounds = array<i64: 1, 32>}, {transform_indices = @transform_7, window_bounds = array<i64: 8, 32>}]} {
    %c0 = arith.constant 0 : index
    %c0_0 = arith.constant 0 : index
    %0 = vector.load %arg1[%c0, %c0_0] : memref<8x32xf32, #tpu.memory_space<vmem>>, vector<8x32xf32>
    %c0_1 = arith.constant 0 : index
    %c0_2 = arith.constant 0 : index
    %1 = vector.load %arg2[%c0_1, %c0_2] : memref<32x96xf32, #tpu.memory_space<vmem>>, vector<32x96xf32>
    %cst = arith.constant dense<0.000000e+00> : vector<8x96xf32>
    %2 = tpu.matmul %0, %1, %cst {dimension_numbers = #tpu.dot_dimension_numbers<[1], [0], [0], [1], [0, 0, 1, 1], [], []>} : vector<8x32xf32>, vector<32x96xf32>, vector<8x96xf32> -> vector<8x96xf32>
    %c0_3 = arith.constant 0 : index
    %c0_4 = arith.constant 0 : index
    %3 = vector.load %arg3[%c0_3, %c0_4] : memref<1x96xf32, #tpu.memory_space<vmem>>, vector<1x96xf32>
    %4 = vector.broadcast %3 : vector<1x96xf32> to vector<8x96xf32>
    %5 = arith.addf %2, %4 : vector<8x96xf32>
    %c0_5 = arith.constant 0 : index
    %c0_6 = arith.constant 0 : index
    %6 = vector.load %arg4[%c0_5, %c0_6] : memref<32x32xf32, #tpu.memory_space<vmem>>, vector<32x32xf32>
    %cst_7 = arith.constant 0.000000e+00 : f32
    %7 = vector.broadcast %cst_7 : f32 to vector<8x32xf32>
    %8 = vector.extract_strided_slice %5 {offsets = [0, 0], sizes = [8, 8], strides = [1, 1]} : vector<8x96xf32> to vector<8x8xf32>
    %9 = vector.extract_strided_slice %5 {offsets = [0, 32], sizes = [8, 8], strides = [1, 1]} : vector<8x96xf32> to vector<8x8xf32>
    %10 = vector.extract_strided_slice %5 {offsets = [0, 64], sizes = [8, 8], strides = [1, 1]} : vector<8x96xf32> to vector<8x8xf32>
    %cst_8 = arith.constant dense<0.000000e+00> : vector<8x8xf32>
    %11 = tpu.matmul %8, %9, %cst_8 {dimension_numbers = #tpu.dot_dimension_numbers<[1], [1], [0], [0], [0, 0, 1, 0], [], []>} : vector<8x8xf32>, vector<8x8xf32>, vector<8x8xf32> -> vector<8x8xf32>
    %cst_9 = arith.constant 0.353553385 : f32
    %12 = vector.broadcast %cst_9 : f32 to vector<8x8xf32>
    %13 = arith.mulf %11, %12 : vector<8x8xf32>
    %cst_10 = arith.constant dense<0xFF800000> : vector<8xf32>
    %14 = vector.multi_reduction <maximumf>, %13, %cst_10 [1] : vector<8x8xf32> to vector<8xf32>
    %15 = vector.shape_cast %14 : vector<8xf32> to vector<8x1xf32>
    %16 = vector.broadcast %15 : vector<8x1xf32> to vector<8x8xf32>
    %17 = arith.subf %13, %16 : vector<8x8xf32>
    %18 = math.exp %17 : vector<8x8xf32>
    %cst_11 = arith.constant dense<0.000000e+00> : vector<8xf32>
    %19 = vector.multi_reduction <add>, %18, %cst_11 [1] : vector<8x8xf32> to vector<8xf32>
    %20 = vector.shape_cast %19 : vector<8xf32> to vector<8x1xf32>
    %21 = tpu.reciprocal %20 {approx = true} : vector<8x1xf32> -> vector<8x1xf32>
    %22 = vector.broadcast %21 : vector<8x1xf32> to vector<8x8xf32>
    %23 = arith.mulf %18, %22 : vector<8x8xf32>
    %cst_12 = arith.constant dense<0.000000e+00> : vector<8x8xf32>
    %24 = tpu.matmul %23, %10, %cst_12 {dimension_numbers = #tpu.dot_dimension_numbers<[1], [0], [0], [1], [0, 0, 1, 1], [], []>} : vector<8x8xf32>, vector<8x8xf32>, vector<8x8xf32> -> vector<8x8xf32>
    %25 = vector.extract_strided_slice %6 {offsets = [0, 0], sizes = [8, 32], strides = [1, 1]} : vector<32x32xf32> to vector<8x32xf32>
    %cst_13 = arith.constant dense<0.000000e+00> : vector<8x32xf32>
    %26 = tpu.matmul %24, %25, %cst_13 {dimension_numbers = #tpu.dot_dimension_numbers<[1], [0], [0], [1], [0, 0, 1, 1], [], []>} : vector<8x8xf32>, vector<8x32xf32>, vector<8x32xf32> -> vector<8x32xf32>
    %27 = arith.addf %7, %26 : vector<8x32xf32>
    %28 = vector.extract_strided_slice %5 {offsets = [0, 8], sizes = [8, 8], strides = [1, 1]} : vector<8x96xf32> to vector<8x8xf32>
    %29 = vector.extract_strided_slice %5 {offsets = [0, 40], sizes = [8, 8], strides = [1, 1]} : vector<8x96xf32> to vector<8x8xf32>
    %30 = vector.extract_strided_slice %5 {offsets = [0, 72], sizes = [8, 8], strides = [1, 1]} : vector<8x96xf32> to vector<8x8xf32>
    %cst_14 = arith.constant dense<0.000000e+00> : vector<8x8xf32>
    %31 = tpu.matmul %28, %29, %cst_14 {dimension_numbers = #tpu.dot_dimension_numbers<[1], [1], [0], [0], [0, 0, 1, 0], [], []>} : vector<8x8xf32>, vector<8x8xf32>, vector<8x8xf32> -> vector<8x8xf32>
    %cst_15 = arith.constant 0.353553385 : f32
    %32 = vector.broadcast %cst_15 : f32 to vector<8x8xf32>
    %33 = arith.mulf %31, %32 : vector<8x8xf32>
    %cst_16 = arith.constant dense<0xFF800000> : vector<8xf32>
    %34 = vector.multi_reduction <maximumf>, %33, %cst_16 [1] : vector<8x8xf32> to vector<8xf32>
    %35 = vector.shape_cast %34 : vector<8xf32> to vector<8x1xf32>
    %36 = vector.broadcast %35 : vector<8x1xf32> to vector<8x8xf32>
    %37 = arith.subf %33, %36 : vector<8x8xf32>
    %38 = math.exp %37 : vector<8x8xf32>
    %cst_17 = arith.constant dense<0.000000e+00> : vector<8xf32>
    %39 = vector.multi_reduction <add>, %38, %cst_17 [1] : vector<8x8xf32> to vector<8xf32>
    %40 = vector.shape_cast %39 : vector<8xf32> to vector<8x1xf32>
    %41 = tpu.reciprocal %40 {approx = true} : vector<8x1xf32> -> vector<8x1xf32>
    %42 = vector.broadcast %41 : vector<8x1xf32> to vector<8x8xf32>
    %43 = arith.mulf %38, %42 : vector<8x8xf32>
    %cst_18 = arith.constant dense<0.000000e+00> : vector<8x8xf32>
    %44 = tpu.matmul %43, %30, %cst_18 {dimension_numbers = #tpu.dot_dimension_numbers<[1], [0], [0], [1], [0, 0, 1, 1], [], []>} : vector<8x8xf32>, vector<8x8xf32>, vector<8x8xf32> -> vector<8x8xf32>
    %45 = vector.extract_strided_slice %6 {offsets = [8, 0], sizes = [8, 32], strides = [1, 1]} : vector<32x32xf32> to vector<8x32xf32>
    %cst_19 = arith.constant dense<0.000000e+00> : vector<8x32xf32>
    %46 = tpu.matmul %44, %45, %cst_19 {dimension_numbers = #tpu.dot_dimension_numbers<[1], [0], [0], [1], [0, 0, 1, 1], [], []>} : vector<8x8xf32>, vector<8x32xf32>, vector<8x32xf32> -> vector<8x32xf32>
    %47 = arith.addf %27, %46 : vector<8x32xf32>
    %48 = vector.extract_strided_slice %5 {offsets = [0, 16], sizes = [8, 8], strides = [1, 1]} : vector<8x96xf32> to vector<8x8xf32>
    %49 = vector.extract_strided_slice %5 {offsets = [0, 48], sizes = [8, 8], strides = [1, 1]} : vector<8x96xf32> to vector<8x8xf32>
    %50 = vector.extract_strided_slice %5 {offsets = [0, 80], sizes = [8, 8], strides = [1, 1]} : vector<8x96xf32> to vector<8x8xf32>
    %cst_20 = arith.constant dense<0.000000e+00> : vector<8x8xf32>
    %51 = tpu.matmul %48, %49, %cst_20 {dimension_numbers = #tpu.dot_dimension_numbers<[1], [1], [0], [0], [0, 0, 1, 0], [], []>} : vector<8x8xf32>, vector<8x8xf32>, vector<8x8xf32> -> vector<8x8xf32>
    %cst_21 = arith.constant 0.353553385 : f32
    %52 = vector.broadcast %cst_21 : f32 to vector<8x8xf32>
    %53 = arith.mulf %51, %52 : vector<8x8xf32>
    %cst_22 = arith.constant dense<0xFF800000> : vector<8xf32>
    %54 = vector.multi_reduction <maximumf>, %53, %cst_22 [1] : vector<8x8xf32> to vector<8xf32>
    %55 = vector.shape_cast %54 : vector<8xf32> to vector<8x1xf32>
    %56 = vector.broadcast %55 : vector<8x1xf32> to vector<8x8xf32>
    %57 = arith.subf %53, %56 : vector<8x8xf32>
    %58 = math.exp %57 : vector<8x8xf32>
    %cst_23 = arith.constant dense<0.000000e+00> : vector<8xf32>
    %59 = vector.multi_reduction <add>, %58, %cst_23 [1] : vector<8x8xf32> to vector<8xf32>
    %60 = vector.shape_cast %59 : vector<8xf32> to vector<8x1xf32>
    %61 = tpu.reciprocal %60 {approx = true} : vector<8x1xf32> -> vector<8x1xf32>
    %62 = vector.broadcast %61 : vector<8x1xf32> to vector<8x8xf32>
    %63 = arith.mulf %58, %62 : vector<8x8xf32>
    %cst_24 = arith.constant dense<0.000000e+00> : vector<8x8xf32>
    %64 = tpu.matmul %63, %50, %cst_24 {dimension_numbers = #tpu.dot_dimension_numbers<[1], [0], [0], [1], [0, 0, 1, 1], [], []>} : vector<8x8xf32>, vector<8x8xf32>, vector<8x8xf32> -> vector<8x8xf32>
    %65 = vector.extract_strided_slice %6 {offsets = [16, 0], sizes = [8, 32], strides = [1, 1]} : vector<32x32xf32> to vector<8x32xf32>
    %cst_25 = arith.constant dense<0.000000e+00> : vector<8x32xf32>
    %66 = tpu.matmul %64, %65, %cst_25 {dimension_numbers = #tpu.dot_dimension_numbers<[1], [0], [0], [1], [0, 0, 1, 1], [], []>} : vector<8x8xf32>, vector<8x32xf32>, vector<8x32xf32> -> vector<8x32xf32>
    %67 = arith.addf %47, %66 : vector<8x32xf32>
    %68 = vector.extract_strided_slice %5 {offsets = [0, 24], sizes = [8, 8], strides = [1, 1]} : vector<8x96xf32> to vector<8x8xf32>
    %69 = vector.extract_strided_slice %5 {offsets = [0, 56], sizes = [8, 8], strides = [1, 1]} : vector<8x96xf32> to vector<8x8xf32>
    %70 = vector.extract_strided_slice %5 {offsets = [0, 88], sizes = [8, 8], strides = [1, 1]} : vector<8x96xf32> to vector<8x8xf32>
    %cst_26 = arith.constant dense<0.000000e+00> : vector<8x8xf32>
    %71 = tpu.matmul %68, %69, %cst_26 {dimension_numbers = #tpu.dot_dimension_numbers<[1], [1], [0], [0], [0, 0, 1, 0], [], []>} : vector<8x8xf32>, vector<8x8xf32>, vector<8x8xf32> -> vector<8x8xf32>
    %cst_27 = arith.constant 0.353553385 : f32
    %72 = vector.broadcast %cst_27 : f32 to vector<8x8xf32>
    %73 = arith.mulf %71, %72 : vector<8x8xf32>
    %cst_28 = arith.constant dense<0xFF800000> : vector<8xf32>
    %74 = vector.multi_reduction <maximumf>, %73, %cst_28 [1] : vector<8x8xf32> to vector<8xf32>
    %75 = vector.shape_cast %74 : vector<8xf32> to vector<8x1xf32>
    %76 = vector.broadcast %75 : vector<8x1xf32> to vector<8x8xf32>
    %77 = arith.subf %73, %76 : vector<8x8xf32>
    %78 = math.exp %77 : vector<8x8xf32>
    %cst_29 = arith.constant dense<0.000000e+00> : vector<8xf32>
    %79 = vector.multi_reduction <add>, %78, %cst_29 [1] : vector<8x8xf32> to vector<8xf32>
    %80 = vector.shape_cast %79 : vector<8xf32> to vector<8x1xf32>
    %81 = tpu.reciprocal %80 {approx = true} : vector<8x1xf32> -> vector<8x1xf32>
    %82 = vector.broadcast %81 : vector<8x1xf32> to vector<8x8xf32>
    %83 = arith.mulf %78, %82 : vector<8x8xf32>
    %cst_30 = arith.constant dense<0.000000e+00> : vector<8x8xf32>
    %84 = tpu.matmul %83, %70, %cst_30 {dimension_numbers = #tpu.dot_dimension_numbers<[1], [0], [0], [1], [0, 0, 1, 1], [], []>} : vector<8x8xf32>, vector<8x8xf32>, vector<8x8xf32> -> vector<8x8xf32>
    %85 = vector.extract_strided_slice %6 {offsets = [24, 0], sizes = [8, 32], strides = [1, 1]} : vector<32x32xf32> to vector<8x32xf32>
    %cst_31 = arith.constant dense<0.000000e+00> : vector<8x32xf32>
    %86 = tpu.matmul %84, %85, %cst_31 {dimension_numbers = #tpu.dot_dimension_numbers<[1], [0], [0], [1], [0, 0, 1, 1], [], []>} : vector<8x8xf32>, vector<8x32xf32>, vector<8x32xf32> -> vector<8x32xf32>
    %87 = arith.addf %67, %86 : vector<8x32xf32>
    %88 = arith.addf %0, %87 : vector<8x32xf32>
    %c0_32 = arith.constant 0 : index
    %c0_33 = arith.constant 0 : index
    %89 = vector.load %arg5[%c0_32, %c0_33] : memref<1x32xf32, #tpu.memory_space<vmem>>, vector<1x32xf32>
    %90 = vector.broadcast %89 : vector<1x32xf32> to vector<8x32xf32>
    %91 = arith.addf %88, %90 : vector<8x32xf32>
    %c0_34 = arith.constant 0 : index
    %c0_35 = arith.constant 0 : index
    %92 = vector.load %arg6[%c0_34, %c0_35] : memref<1x32xf32, #tpu.memory_space<vmem>>, vector<1x32xf32>
    %c0_36 = arith.constant 0 : index
    %c0_37 = arith.constant 0 : index
    %93 = vector.load %arg7[%c0_36, %c0_37] : memref<1x32xf32, #tpu.memory_space<vmem>>, vector<1x32xf32>
    %cst_38 = arith.constant dense<0.000000e+00> : vector<8xf32>
    %94 = vector.multi_reduction <add>, %91, %cst_38 [1] : vector<8x32xf32> to vector<8xf32>
    %95 = vector.shape_cast %94 : vector<8xf32> to vector<8x1xf32>
    %cst_39 = arith.constant 3.200000e+01 : f32
    %96 = vector.broadcast %cst_39 : f32 to vector<8x1xf32>
    %97 = arith.divf %95, %96 : vector<8x1xf32>
    %98 = vector.broadcast %97 : vector<8x1xf32> to vector<8x32xf32>
    %99 = arith.subf %91, %98 : vector<8x32xf32>
    %100 = arith.mulf %99, %99 : vector<8x32xf32>
    %cst_40 = arith.constant dense<0.000000e+00> : vector<8xf32>
    %101 = vector.multi_reduction <add>, %100, %cst_40 [1] : vector<8x32xf32> to vector<8xf32>
    %102 = vector.shape_cast %101 : vector<8xf32> to vector<8x1xf32>
    %cst_41 = arith.constant 3.200000e+01 : f32
    %103 = vector.broadcast %cst_41 : f32 to vector<8x1xf32>
    %104 = arith.divf %102, %103 : vector<8x1xf32>
    %105 = vector.broadcast %97 : vector<8x1xf32> to vector<8x32xf32>
    %106 = arith.subf %91, %105 : vector<8x32xf32>
    %cst_42 = arith.constant 9.99999974E-6 : f32
    %107 = vector.broadcast %cst_42 : f32 to vector<8x1xf32>
    %108 = arith.addf %104, %107 : vector<8x1xf32>
    %109 = math.rsqrt %108 : vector<8x1xf32>
    %110 = vector.broadcast %109 : vector<8x1xf32> to vector<8x32xf32>
    %111 = arith.mulf %106, %110 : vector<8x32xf32>
    %112 = vector.broadcast %92 : vector<1x32xf32> to vector<8x32xf32>
    %113 = arith.mulf %111, %112 : vector<8x32xf32>
    %114 = vector.broadcast %93 : vector<1x32xf32> to vector<8x32xf32>
    %115 = arith.addf %113, %114 : vector<8x32xf32>
    %c0_43 = arith.constant 0 : index
    %c0_44 = arith.constant 0 : index
    %116 = vector.load %arg8[%c0_43, %c0_44] : memref<8x32xf32, #tpu.memory_space<vmem>>, vector<8x32xf32>
    tpu.vector_store %arg8[%c0_43, %c0_44], %115 {strides = array<i32>} : memref<8x32xf32, #tpu.memory_space<vmem>>, vector<8x32xf32>,
    return
  }
  func.func @transform_0(%arg0: i32) -> (i32, i32) {
    %c0_i32 = arith.constant 0 : i32
    %c0_i32_0 = arith.constant 0 : i32
    return %arg0, %c0_i32 : i32, i32
  }
  func.func @transform_1(%arg0: i32) -> (i32, i32) {
    %c0_i32 = arith.constant 0 : i32
    %c0_i32_0 = arith.constant 0 : i32
    %c0_i32_1 = arith.constant 0 : i32
    return %c0_i32, %c0_i32_0 : i32, i32
  }
  func.func @transform_2(%arg0: i32) -> (i32, i32) {
    %c0_i32 = arith.constant 0 : i32
    %c0_i32_0 = arith.constant 0 : i32
    %c0_i32_1 = arith.constant 0 : i32
    return %c0_i32, %c0_i32_0 : i32, i32
  }
  func.func @transform_3(%arg0: i32) -> (i32, i32) {
    %c0_i32 = arith.constant 0 : i32
    %c0_i32_0 = arith.constant 0 : i32
    %c0_i32_1 = arith.constant 0 : i32
    return %c0_i32, %c0_i32_0 : i32, i32
  }
  func.func @transform_4(%arg0: i32) -> (i32, i32) {
    %c0_i32 = arith.constant 0 : i32
    %c0_i32_0 = arith.constant 0 : i32
    %c0_i32_1 = arith.constant 0 : i32
    return %c0_i32, %c0_i32_0 : i32, i32
  }
  func.func @transform_5(%arg0: i32) -> (i32, i32) {
    %c0_i32 = arith.constant 0 : i32
    %c0_i32_0 = arith.constant 0 : i32
    %c0_i32_1 = arith.constant 0 : i32
    return %c0_i32, %c0_i32_0 : i32, i32
  }
  func.func @transform_6(%arg0: i32) -> (i32, i32) {
    %c0_i32 = arith.constant 0 : i32
    %c0_i32_0 = arith.constant 0 : i32
    %c0_i32_1 = arith.constant 0 : i32
    return %c0_i32, %c0_i32_0 : i32, i32
  }
  func.func @transform_7(%arg0: i32) -> (i32, i32) {
    %c0_i32 = arith.constant 0 : i32
    %c0_i32_0 = arith.constant 0 : i32
    return %arg0, %c0_i32 : i32, i32
  }
}

module attributes {stable_mosaic.version = 11 : i64} {
  func.func @_ln_kernel(%arg0: i32, %arg1: memref<16x32xf32, #tpu.memory_space<vmem>>, %arg2: memref<1x32xf32, #tpu.memory_space<vmem>>, %arg3: memref<1x32xf32, #tpu.memory_space<vmem>>, %arg4: memref<16x32xf32, #tpu.memory_space<vmem>>) attributes {dimension_semantics = [#tpu.dimension_semantics<parallel>], iteration_bounds = array<i64: 1>, scalar_prefetch = 0 : i64, scratch_operands = 0 : i64, tpu.core_type = #tpu.core_type<tc>, window_params = [{transform_indices = @transform_0, window_bounds = array<i64: 16, 32>}, {pipeline_mode = #tpu.pipeline_mode<synchronous>, transform_indices = @transform_1, window_bounds = array<i64: 1, 32>}, {pipeline_mode = #tpu.pipeline_mode<synchronous>, transform_indices = @transform_2, window_bounds = array<i64: 1, 32>}, {transform_indices = @transform_3, window_bounds = array<i64: 16, 32>}]} {
    %c0 = arith.constant 0 : index
    %c0_0 = arith.constant 0 : index
    %0 = vector.load %arg1[%c0, %c0_0] : memref<16x32xf32, #tpu.memory_space<vmem>>, vector<16x32xf32>
    %c0_1 = arith.constant 0 : index
    %c0_2 = arith.constant 0 : index
    %1 = vector.load %arg2[%c0_1, %c0_2] : memref<1x32xf32, #tpu.memory_space<vmem>>, vector<1x32xf32>
    %c0_3 = arith.constant 0 : index
    %c0_4 = arith.constant 0 : index
    %2 = vector.load %arg3[%c0_3, %c0_4] : memref<1x32xf32, #tpu.memory_space<vmem>>, vector<1x32xf32>
    %cst = arith.constant dense<0.000000e+00> : vector<16xf32>
    %3 = vector.multi_reduction <add>, %0, %cst [1] : vector<16x32xf32> to vector<16xf32>
    %4 = vector.shape_cast %3 : vector<16xf32> to vector<16x1xf32>
    %cst_5 = arith.constant 3.200000e+01 : f32
    %5 = vector.broadcast %cst_5 : f32 to vector<16x1xf32>
    %6 = arith.divf %4, %5 : vector<16x1xf32>
    %7 = vector.broadcast %6 : vector<16x1xf32> to vector<16x32xf32>
    %8 = arith.subf %0, %7 : vector<16x32xf32>
    %9 = arith.mulf %8, %8 : vector<16x32xf32>
    %cst_6 = arith.constant dense<0.000000e+00> : vector<16xf32>
    %10 = vector.multi_reduction <add>, %9, %cst_6 [1] : vector<16x32xf32> to vector<16xf32>
    %11 = vector.shape_cast %10 : vector<16xf32> to vector<16x1xf32>
    %cst_7 = arith.constant 3.200000e+01 : f32
    %12 = vector.broadcast %cst_7 : f32 to vector<16x1xf32>
    %13 = arith.divf %11, %12 : vector<16x1xf32>
    %14 = vector.broadcast %6 : vector<16x1xf32> to vector<16x32xf32>
    %15 = arith.subf %0, %14 : vector<16x32xf32>
    %cst_8 = arith.constant 9.99999974E-6 : f32
    %16 = vector.broadcast %cst_8 : f32 to vector<16x1xf32>
    %17 = arith.addf %13, %16 : vector<16x1xf32>
    %18 = math.rsqrt %17 : vector<16x1xf32>
    %19 = vector.broadcast %18 : vector<16x1xf32> to vector<16x32xf32>
    %20 = arith.mulf %15, %19 : vector<16x32xf32>
    %21 = vector.broadcast %1 : vector<1x32xf32> to vector<16x32xf32>
    %22 = arith.mulf %20, %21 : vector<16x32xf32>
    %23 = vector.broadcast %2 : vector<1x32xf32> to vector<16x32xf32>
    %24 = arith.addf %22, %23 : vector<16x32xf32>
    %c0_9 = arith.constant 0 : index
    %c0_10 = arith.constant 0 : index
    %25 = vector.load %arg4[%c0_9, %c0_10] : memref<16x32xf32, #tpu.memory_space<vmem>>, vector<16x32xf32>
    tpu.vector_store %arg4[%c0_9, %c0_10], %24 {strides = array<i32>} : memref<16x32xf32, #tpu.memory_space<vmem>>, vector<16x32xf32>,
    return
  }
  func.func @transform_0(%arg0: i32) -> (i32, i32) {
    %c0_i32 = arith.constant 0 : i32
    %c0_i32_0 = arith.constant 0 : i32
    return %arg0, %c0_i32 : i32, i32
  }
  func.func @transform_1(%arg0: i32) -> (i32, i32) {
    %c0_i32 = arith.constant 0 : i32
    %c0_i32_0 = arith.constant 0 : i32
    %c0_i32_1 = arith.constant 0 : i32
    return %c0_i32, %c0_i32_0 : i32, i32
  }
  func.func @transform_2(%arg0: i32) -> (i32, i32) {
    %c0_i32 = arith.constant 0 : i32
    %c0_i32_0 = arith.constant 0 : i32
    %c0_i32_1 = arith.constant 0 : i32
    return %c0_i32, %c0_i32_0 : i32, i32
  }
  func.func @transform_3(%arg0: i32) -> (i32, i32) {
    %c0_i32 = arith.constant 0 : i32
    %c0_i32_0 = arith.constant 0 : i32
    return %arg0, %c0_i32 : i32, i32
  }
}

module attributes {stable_mosaic.version = 11 : i64} {
  func.func @_heads_kernel(%arg0: i32, %arg1: memref<16x32xf32, #tpu.memory_space<vmem>>, %arg2: memref<32x128xf32, #tpu.memory_space<vmem>>, %arg3: memref<1x128xf32, #tpu.memory_space<vmem>>, %arg4: memref<16x128xf32, #tpu.memory_space<vmem>>) attributes {dimension_semantics = [#tpu.dimension_semantics<parallel>], iteration_bounds = array<i64: 1>, scalar_prefetch = 0 : i64, scratch_operands = 0 : i64, tpu.core_type = #tpu.core_type<tc>, window_params = [{transform_indices = @transform_0, window_bounds = array<i64: 16, 32>}, {pipeline_mode = #tpu.pipeline_mode<synchronous>, transform_indices = @transform_1, window_bounds = array<i64: 32, 128>}, {pipeline_mode = #tpu.pipeline_mode<synchronous>, transform_indices = @transform_2, window_bounds = array<i64: 1, 128>}, {transform_indices = @transform_3, window_bounds = array<i64: 16, 128>}]} {
    %c0 = arith.constant 0 : index
    %c0_0 = arith.constant 0 : index
    %0 = vector.load %arg1[%c0, %c0_0] : memref<16x32xf32, #tpu.memory_space<vmem>>, vector<16x32xf32>
    %c0_1 = arith.constant 0 : index
    %c0_2 = arith.constant 0 : index
    %1 = vector.load %arg2[%c0_1, %c0_2] : memref<32x128xf32, #tpu.memory_space<vmem>>, vector<32x128xf32>
    %cst = arith.constant dense<0.000000e+00> : vector<16x128xf32>
    %2 = tpu.matmul %0, %1, %cst {dimension_numbers = #tpu.dot_dimension_numbers<[1], [0], [0], [1], [0, 0, 1, 1], [], []>} : vector<16x32xf32>, vector<32x128xf32>, vector<16x128xf32> -> vector<16x128xf32>
    %c0_3 = arith.constant 0 : index
    %c0_4 = arith.constant 0 : index
    %3 = vector.load %arg3[%c0_3, %c0_4] : memref<1x128xf32, #tpu.memory_space<vmem>>, vector<1x128xf32>
    %4 = vector.broadcast %3 : vector<1x128xf32> to vector<16x128xf32>
    %5 = arith.addf %2, %4 : vector<16x128xf32>
    %c0_5 = arith.constant 0 : index
    %c0_6 = arith.constant 0 : index
    %6 = vector.load %arg4[%c0_5, %c0_6] : memref<16x128xf32, #tpu.memory_space<vmem>>, vector<16x128xf32>
    tpu.vector_store %arg4[%c0_5, %c0_6], %5 {strides = array<i32>} : memref<16x128xf32, #tpu.memory_space<vmem>>, vector<16x128xf32>,
    return
  }
  func.func @transform_0(%arg0: i32) -> (i32, i32) {
    %c0_i32 = arith.constant 0 : i32
    %c0_i32_0 = arith.constant 0 : i32
    return %arg0, %c0_i32 : i32, i32
  }
  func.func @transform_1(%arg0: i32) -> (i32, i32) {
    %c0_i32 = arith.constant 0 : i32
    %c0_i32_0 = arith.constant 0 : i32
    %c0_i32_1 = arith.constant 0 : i32
    return %c0_i32, %c0_i32_0 : i32, i32
  }
  func.func @transform_2(%arg0: i32) -> (i32, i32) {
    %c0_i32 = arith.constant 0 : i32
    %c0_i32_0 = arith.constant 0 : i32
    %c0_i32_1 = arith.constant 0 : i32
    return %c0_i32, %c0_i32_0 : i32, i32
  }
  func.func @transform_3(%arg0: i32) -> (i32, i32) {
    %c0_i32 = arith.constant 0 : i32
    %c0_i32_0 = arith.constant 0 : i32
    return %arg0, %c0_i32 : i32, i32
  }
}

module attributes {stable_mosaic.version = 11 : i64} {
  func.func @_cross_attn_block_kernel(%arg0: i32, %arg1: memref<8x32xf32, #tpu.memory_space<vmem>>, %arg2: memref<8x32xf32, #tpu.memory_space<vmem>>, %arg3: memref<32x32xf32, #tpu.memory_space<vmem>>, %arg4: memref<1x32xf32, #tpu.memory_space<vmem>>, %arg5: memref<32x64xf32, #tpu.memory_space<vmem>>, %arg6: memref<1x64xf32, #tpu.memory_space<vmem>>, %arg7: memref<32x32xf32, #tpu.memory_space<vmem>>, %arg8: memref<1x32xf32, #tpu.memory_space<vmem>>, %arg9: memref<1x32xf32, #tpu.memory_space<vmem>>, %arg10: memref<1x32xf32, #tpu.memory_space<vmem>>, %arg11: memref<8x32xf32, #tpu.memory_space<vmem>>) attributes {dimension_semantics = [#tpu.dimension_semantics<parallel>], iteration_bounds = array<i64: 2>, scalar_prefetch = 0 : i64, scratch_operands = 0 : i64, tpu.core_type = #tpu.core_type<tc>, window_params = [{transform_indices = @transform_0, window_bounds = array<i64: 8, 32>}, {transform_indices = @transform_1, window_bounds = array<i64: 8, 32>}, {pipeline_mode = #tpu.pipeline_mode<synchronous>, transform_indices = @transform_2, window_bounds = array<i64: 32, 32>}, {pipeline_mode = #tpu.pipeline_mode<synchronous>, transform_indices = @transform_3, window_bounds = array<i64: 1, 32>}, {pipeline_mode = #tpu.pipeline_mode<synchronous>, transform_indices = @transform_4, window_bounds = array<i64: 32, 64>}, {pipeline_mode = #tpu.pipeline_mode<synchronous>, transform_indices = @transform_5, window_bounds = array<i64: 1, 64>}, {pipeline_mode = #tpu.pipeline_mode<synchronous>, transform_indices = @transform_6, window_bounds = array<i64: 32, 32>}, {pipeline_mode = #tpu.pipeline_mode<synchronous>, transform_indices = @transform_7, window_bounds = array<i64: 1, 32>}, {pipeline_mode = #tpu.pipeline_mode<synchronous>, transform_indices = @transform_8, window_bounds = array<i64: 1, 32>}, {pipeline_mode = #tpu.pipeline_mode<synchronous>, transform_indices = @transform_9, window_bounds = array<i64: 1, 32>}, {transform_indices = @transform_10, window_bounds = array<i64: 8, 32>}]} {
    %c0 = arith.constant 0 : index
    %c0_0 = arith.constant 0 : index
    %0 = vector.load %arg1[%c0, %c0_0] : memref<8x32xf32, #tpu.memory_space<vmem>>, vector<8x32xf32>
    %c0_1 = arith.constant 0 : index
    %c0_2 = arith.constant 0 : index
    %1 = vector.load %arg2[%c0_1, %c0_2] : memref<8x32xf32, #tpu.memory_space<vmem>>, vector<8x32xf32>
    %c0_3 = arith.constant 0 : index
    %c0_4 = arith.constant 0 : index
    %2 = vector.load %arg3[%c0_3, %c0_4] : memref<32x32xf32, #tpu.memory_space<vmem>>, vector<32x32xf32>
    %cst = arith.constant dense<0.000000e+00> : vector<8x32xf32>
    %3 = tpu.matmul %0, %2, %cst {dimension_numbers = #tpu.dot_dimension_numbers<[1], [0], [0], [1], [0, 0, 1, 1], [], []>} : vector<8x32xf32>, vector<32x32xf32>, vector<8x32xf32> -> vector<8x32xf32>
    %c0_5 = arith.constant 0 : index
    %c0_6 = arith.constant 0 : index
    %4 = vector.load %arg4[%c0_5, %c0_6] : memref<1x32xf32, #tpu.memory_space<vmem>>, vector<1x32xf32>
    %5 = vector.broadcast %4 : vector<1x32xf32> to vector<8x32xf32>
    %6 = arith.addf %3, %5 : vector<8x32xf32>
    %c0_7 = arith.constant 0 : index
    %c0_8 = arith.constant 0 : index
    %7 = vector.load %arg5[%c0_7, %c0_8] : memref<32x64xf32, #tpu.memory_space<vmem>>, vector<32x64xf32>
    %cst_9 = arith.constant dense<0.000000e+00> : vector<8x64xf32>
    %8 = tpu.matmul %1, %7, %cst_9 {dimension_numbers = #tpu.dot_dimension_numbers<[1], [0], [0], [1], [0, 0, 1, 1], [], []>} : vector<8x32xf32>, vector<32x64xf32>, vector<8x64xf32> -> vector<8x64xf32>
    %c0_10 = arith.constant 0 : index
    %c0_11 = arith.constant 0 : index
    %9 = vector.load %arg6[%c0_10, %c0_11] : memref<1x64xf32, #tpu.memory_space<vmem>>, vector<1x64xf32>
    %10 = vector.broadcast %9 : vector<1x64xf32> to vector<8x64xf32>
    %11 = arith.addf %8, %10 : vector<8x64xf32>
    %c0_12 = arith.constant 0 : index
    %c0_13 = arith.constant 0 : index
    %12 = vector.load %arg7[%c0_12, %c0_13] : memref<32x32xf32, #tpu.memory_space<vmem>>, vector<32x32xf32>
    %cst_14 = arith.constant 0.000000e+00 : f32
    %13 = vector.broadcast %cst_14 : f32 to vector<8x32xf32>
    %14 = vector.extract_strided_slice %6 {offsets = [0, 0], sizes = [8, 8], strides = [1, 1]} : vector<8x32xf32> to vector<8x8xf32>
    %15 = vector.extract_strided_slice %11 {offsets = [0, 0], sizes = [8, 8], strides = [1, 1]} : vector<8x64xf32> to vector<8x8xf32>
    %16 = vector.extract_strided_slice %11 {offsets = [0, 32], sizes = [8, 8], strides = [1, 1]} : vector<8x64xf32> to vector<8x8xf32>
    %cst_15 = arith.constant dense<0.000000e+00> : vector<8x8xf32>
    %17 = tpu.matmul %14, %15, %cst_15 {dimension_numbers = #tpu.dot_dimension_numbers<[1], [1], [0], [0], [0, 0, 1, 0], [], []>} : vector<8x8xf32>, vector<8x8xf32>, vector<8x8xf32> -> vector<8x8xf32>
    %cst_16 = arith.constant 0.353553385 : f32
    %18 = vector.broadcast %cst_16 : f32 to vector<8x8xf32>
    %19 = arith.mulf %17, %18 : vector<8x8xf32>
    %cst_17 = arith.constant dense<0xFF800000> : vector<8xf32>
    %20 = vector.multi_reduction <maximumf>, %19, %cst_17 [1] : vector<8x8xf32> to vector<8xf32>
    %21 = vector.shape_cast %20 : vector<8xf32> to vector<8x1xf32>
    %22 = vector.broadcast %21 : vector<8x1xf32> to vector<8x8xf32>
    %23 = arith.subf %19, %22 : vector<8x8xf32>
    %24 = math.exp %23 : vector<8x8xf32>
    %cst_18 = arith.constant dense<0.000000e+00> : vector<8xf32>
    %25 = vector.multi_reduction <add>, %24, %cst_18 [1] : vector<8x8xf32> to vector<8xf32>
    %26 = vector.shape_cast %25 : vector<8xf32> to vector<8x1xf32>
    %27 = tpu.reciprocal %26 {approx = true} : vector<8x1xf32> -> vector<8x1xf32>
    %28 = vector.broadcast %27 : vector<8x1xf32> to vector<8x8xf32>
    %29 = arith.mulf %24, %28 : vector<8x8xf32>
    %cst_19 = arith.constant dense<0.000000e+00> : vector<8x8xf32>
    %30 = tpu.matmul %29, %16, %cst_19 {dimension_numbers = #tpu.dot_dimension_numbers<[1], [0], [0], [1], [0, 0, 1, 1], [], []>} : vector<8x8xf32>, vector<8x8xf32>, vector<8x8xf32> -> vector<8x8xf32>
    %31 = vector.extract_strided_slice %12 {offsets = [0, 0], sizes = [8, 32], strides = [1, 1]} : vector<32x32xf32> to vector<8x32xf32>
    %cst_20 = arith.constant dense<0.000000e+00> : vector<8x32xf32>
    %32 = tpu.matmul %30, %31, %cst_20 {dimension_numbers = #tpu.dot_dimension_numbers<[1], [0], [0], [1], [0, 0, 1, 1], [], []>} : vector<8x8xf32>, vector<8x32xf32>, vector<8x32xf32> -> vector<8x32xf32>
    %33 = arith.addf %13, %32 : vector<8x32xf32>
    %34 = vector.extract_strided_slice %6 {offsets = [0, 8], sizes = [8, 8], strides = [1, 1]} : vector<8x32xf32> to vector<8x8xf32>
    %35 = vector.extract_strided_slice %11 {offsets = [0, 8], sizes = [8, 8], strides = [1, 1]} : vector<8x64xf32> to vector<8x8xf32>
    %36 = vector.extract_strided_slice %11 {offsets = [0, 40], sizes = [8, 8], strides = [1, 1]} : vector<8x64xf32> to vector<8x8xf32>
    %cst_21 = arith.constant dense<0.000000e+00> : vector<8x8xf32>
    %37 = tpu.matmul %34, %35, %cst_21 {dimension_numbers = #tpu.dot_dimension_numbers<[1], [1], [0], [0], [0, 0, 1, 0], [], []>} : vector<8x8xf32>, vector<8x8xf32>, vector<8x8xf32> -> vector<8x8xf32>
    %cst_22 = arith.constant 0.353553385 : f32
    %38 = vector.broadcast %cst_22 : f32 to vector<8x8xf32>
    %39 = arith.mulf %37, %38 : vector<8x8xf32>
    %cst_23 = arith.constant dense<0xFF800000> : vector<8xf32>
    %40 = vector.multi_reduction <maximumf>, %39, %cst_23 [1] : vector<8x8xf32> to vector<8xf32>
    %41 = vector.shape_cast %40 : vector<8xf32> to vector<8x1xf32>
    %42 = vector.broadcast %41 : vector<8x1xf32> to vector<8x8xf32>
    %43 = arith.subf %39, %42 : vector<8x8xf32>
    %44 = math.exp %43 : vector<8x8xf32>
    %cst_24 = arith.constant dense<0.000000e+00> : vector<8xf32>
    %45 = vector.multi_reduction <add>, %44, %cst_24 [1] : vector<8x8xf32> to vector<8xf32>
    %46 = vector.shape_cast %45 : vector<8xf32> to vector<8x1xf32>
    %47 = tpu.reciprocal %46 {approx = true} : vector<8x1xf32> -> vector<8x1xf32>
    %48 = vector.broadcast %47 : vector<8x1xf32> to vector<8x8xf32>
    %49 = arith.mulf %44, %48 : vector<8x8xf32>
    %cst_25 = arith.constant dense<0.000000e+00> : vector<8x8xf32>
    %50 = tpu.matmul %49, %36, %cst_25 {dimension_numbers = #tpu.dot_dimension_numbers<[1], [0], [0], [1], [0, 0, 1, 1], [], []>} : vector<8x8xf32>, vector<8x8xf32>, vector<8x8xf32> -> vector<8x8xf32>
    %51 = vector.extract_strided_slice %12 {offsets = [8, 0], sizes = [8, 32], strides = [1, 1]} : vector<32x32xf32> to vector<8x32xf32>
    %cst_26 = arith.constant dense<0.000000e+00> : vector<8x32xf32>
    %52 = tpu.matmul %50, %51, %cst_26 {dimension_numbers = #tpu.dot_dimension_numbers<[1], [0], [0], [1], [0, 0, 1, 1], [], []>} : vector<8x8xf32>, vector<8x32xf32>, vector<8x32xf32> -> vector<8x32xf32>
    %53 = arith.addf %33, %52 : vector<8x32xf32>
    %54 = vector.extract_strided_slice %6 {offsets = [0, 16], sizes = [8, 8], strides = [1, 1]} : vector<8x32xf32> to vector<8x8xf32>
    %55 = vector.extract_strided_slice %11 {offsets = [0, 16], sizes = [8, 8], strides = [1, 1]} : vector<8x64xf32> to vector<8x8xf32>
    %56 = vector.extract_strided_slice %11 {offsets = [0, 48], sizes = [8, 8], strides = [1, 1]} : vector<8x64xf32> to vector<8x8xf32>
    %cst_27 = arith.constant dense<0.000000e+00> : vector<8x8xf32>
    %57 = tpu.matmul %54, %55, %cst_27 {dimension_numbers = #tpu.dot_dimension_numbers<[1], [1], [0], [0], [0, 0, 1, 0], [], []>} : vector<8x8xf32>, vector<8x8xf32>, vector<8x8xf32> -> vector<8x8xf32>
    %cst_28 = arith.constant 0.353553385 : f32
    %58 = vector.broadcast %cst_28 : f32 to vector<8x8xf32>
    %59 = arith.mulf %57, %58 : vector<8x8xf32>
    %cst_29 = arith.constant dense<0xFF800000> : vector<8xf32>
    %60 = vector.multi_reduction <maximumf>, %59, %cst_29 [1] : vector<8x8xf32> to vector<8xf32>
    %61 = vector.shape_cast %60 : vector<8xf32> to vector<8x1xf32>
    %62 = vector.broadcast %61 : vector<8x1xf32> to vector<8x8xf32>
    %63 = arith.subf %59, %62 : vector<8x8xf32>
    %64 = math.exp %63 : vector<8x8xf32>
    %cst_30 = arith.constant dense<0.000000e+00> : vector<8xf32>
    %65 = vector.multi_reduction <add>, %64, %cst_30 [1] : vector<8x8xf32> to vector<8xf32>
    %66 = vector.shape_cast %65 : vector<8xf32> to vector<8x1xf32>
    %67 = tpu.reciprocal %66 {approx = true} : vector<8x1xf32> -> vector<8x1xf32>
    %68 = vector.broadcast %67 : vector<8x1xf32> to vector<8x8xf32>
    %69 = arith.mulf %64, %68 : vector<8x8xf32>
    %cst_31 = arith.constant dense<0.000000e+00> : vector<8x8xf32>
    %70 = tpu.matmul %69, %56, %cst_31 {dimension_numbers = #tpu.dot_dimension_numbers<[1], [0], [0], [1], [0, 0, 1, 1], [], []>} : vector<8x8xf32>, vector<8x8xf32>, vector<8x8xf32> -> vector<8x8xf32>
    %71 = vector.extract_strided_slice %12 {offsets = [16, 0], sizes = [8, 32], strides = [1, 1]} : vector<32x32xf32> to vector<8x32xf32>
    %cst_32 = arith.constant dense<0.000000e+00> : vector<8x32xf32>
    %72 = tpu.matmul %70, %71, %cst_32 {dimension_numbers = #tpu.dot_dimension_numbers<[1], [0], [0], [1], [0, 0, 1, 1], [], []>} : vector<8x8xf32>, vector<8x32xf32>, vector<8x32xf32> -> vector<8x32xf32>
    %73 = arith.addf %53, %72 : vector<8x32xf32>
    %74 = vector.extract_strided_slice %6 {offsets = [0, 24], sizes = [8, 8], strides = [1, 1]} : vector<8x32xf32> to vector<8x8xf32>
    %75 = vector.extract_strided_slice %11 {offsets = [0, 24], sizes = [8, 8], strides = [1, 1]} : vector<8x64xf32> to vector<8x8xf32>
    %76 = vector.extract_strided_slice %11 {offsets = [0, 56], sizes = [8, 8], strides = [1, 1]} : vector<8x64xf32> to vector<8x8xf32>
    %cst_33 = arith.constant dense<0.000000e+00> : vector<8x8xf32>
    %77 = tpu.matmul %74, %75, %cst_33 {dimension_numbers = #tpu.dot_dimension_numbers<[1], [1], [0], [0], [0, 0, 1, 0], [], []>} : vector<8x8xf32>, vector<8x8xf32>, vector<8x8xf32> -> vector<8x8xf32>
    %cst_34 = arith.constant 0.353553385 : f32
    %78 = vector.broadcast %cst_34 : f32 to vector<8x8xf32>
    %79 = arith.mulf %77, %78 : vector<8x8xf32>
    %cst_35 = arith.constant dense<0xFF800000> : vector<8xf32>
    %80 = vector.multi_reduction <maximumf>, %79, %cst_35 [1] : vector<8x8xf32> to vector<8xf32>
    %81 = vector.shape_cast %80 : vector<8xf32> to vector<8x1xf32>
    %82 = vector.broadcast %81 : vector<8x1xf32> to vector<8x8xf32>
    %83 = arith.subf %79, %82 : vector<8x8xf32>
    %84 = math.exp %83 : vector<8x8xf32>
    %cst_36 = arith.constant dense<0.000000e+00> : vector<8xf32>
    %85 = vector.multi_reduction <add>, %84, %cst_36 [1] : vector<8x8xf32> to vector<8xf32>
    %86 = vector.shape_cast %85 : vector<8xf32> to vector<8x1xf32>
    %87 = tpu.reciprocal %86 {approx = true} : vector<8x1xf32> -> vector<8x1xf32>
    %88 = vector.broadcast %87 : vector<8x1xf32> to vector<8x8xf32>
    %89 = arith.mulf %84, %88 : vector<8x8xf32>
    %cst_37 = arith.constant dense<0.000000e+00> : vector<8x8xf32>
    %90 = tpu.matmul %89, %76, %cst_37 {dimension_numbers = #tpu.dot_dimension_numbers<[1], [0], [0], [1], [0, 0, 1, 1], [], []>} : vector<8x8xf32>, vector<8x8xf32>, vector<8x8xf32> -> vector<8x8xf32>
    %91 = vector.extract_strided_slice %12 {offsets = [24, 0], sizes = [8, 32], strides = [1, 1]} : vector<32x32xf32> to vector<8x32xf32>
    %cst_38 = arith.constant dense<0.000000e+00> : vector<8x32xf32>
    %92 = tpu.matmul %90, %91, %cst_38 {dimension_numbers = #tpu.dot_dimension_numbers<[1], [0], [0], [1], [0, 0, 1, 1], [], []>} : vector<8x8xf32>, vector<8x32xf32>, vector<8x32xf32> -> vector<8x32xf32>
    %93 = arith.addf %73, %92 : vector<8x32xf32>
    %94 = arith.addf %0, %93 : vector<8x32xf32>
    %c0_39 = arith.constant 0 : index
    %c0_40 = arith.constant 0 : index
    %95 = vector.load %arg8[%c0_39, %c0_40] : memref<1x32xf32, #tpu.memory_space<vmem>>, vector<1x32xf32>
    %96 = vector.broadcast %95 : vector<1x32xf32> to vector<8x32xf32>
    %97 = arith.addf %94, %96 : vector<8x32xf32>
    %c0_41 = arith.constant 0 : index
    %c0_42 = arith.constant 0 : index
    %98 = vector.load %arg9[%c0_41, %c0_42] : memref<1x32xf32, #tpu.memory_space<vmem>>, vector<1x32xf32>
    %c0_43 = arith.constant 0 : index
    %c0_44 = arith.constant 0 : index
    %99 = vector.load %arg10[%c0_43, %c0_44] : memref<1x32xf32, #tpu.memory_space<vmem>>, vector<1x32xf32>
    %cst_45 = arith.constant dense<0.000000e+00> : vector<8xf32>
    %100 = vector.multi_reduction <add>, %97, %cst_45 [1] : vector<8x32xf32> to vector<8xf32>
    %101 = vector.shape_cast %100 : vector<8xf32> to vector<8x1xf32>
    %cst_46 = arith.constant 3.200000e+01 : f32
    %102 = vector.broadcast %cst_46 : f32 to vector<8x1xf32>
    %103 = arith.divf %101, %102 : vector<8x1xf32>
    %104 = vector.broadcast %103 : vector<8x1xf32> to vector<8x32xf32>
    %105 = arith.subf %97, %104 : vector<8x32xf32>
    %106 = arith.mulf %105, %105 : vector<8x32xf32>
    %cst_47 = arith.constant dense<0.000000e+00> : vector<8xf32>
    %107 = vector.multi_reduction <add>, %106, %cst_47 [1] : vector<8x32xf32> to vector<8xf32>
    %108 = vector.shape_cast %107 : vector<8xf32> to vector<8x1xf32>
    %cst_48 = arith.constant 3.200000e+01 : f32
    %109 = vector.broadcast %cst_48 : f32 to vector<8x1xf32>
    %110 = arith.divf %108, %109 : vector<8x1xf32>
    %111 = vector.broadcast %103 : vector<8x1xf32> to vector<8x32xf32>
    %112 = arith.subf %97, %111 : vector<8x32xf32>
    %cst_49 = arith.constant 9.99999974E-6 : f32
    %113 = vector.broadcast %cst_49 : f32 to vector<8x1xf32>
    %114 = arith.addf %110, %113 : vector<8x1xf32>
    %115 = math.rsqrt %114 : vector<8x1xf32>
    %116 = vector.broadcast %115 : vector<8x1xf32> to vector<8x32xf32>
    %117 = arith.mulf %112, %116 : vector<8x32xf32>
    %118 = vector.broadcast %98 : vector<1x32xf32> to vector<8x32xf32>
    %119 = arith.mulf %117, %118 : vector<8x32xf32>
    %120 = vector.broadcast %99 : vector<1x32xf32> to vector<8x32xf32>
    %121 = arith.addf %119, %120 : vector<8x32xf32>
    %c0_50 = arith.constant 0 : index
    %c0_51 = arith.constant 0 : index
    %122 = vector.load %arg11[%c0_50, %c0_51] : memref<8x32xf32, #tpu.memory_space<vmem>>, vector<8x32xf32>
    tpu.vector_store %arg11[%c0_50, %c0_51], %121 {strides = array<i32>} : memref<8x32xf32, #tpu.memory_space<vmem>>, vector<8x32xf32>,
    return
  }
  func.func @transform_0(%arg0: i32) -> (i32, i32) {
    %c0_i32 = arith.constant 0 : i32
    %c0_i32_0 = arith.constant 0 : i32
    return %arg0, %c0_i32 : i32, i32
  }
  func.func @transform_1(%arg0: i32) -> (i32, i32) {
    %c0_i32 = arith.constant 0 : i32
    %c0_i32_0 = arith.constant 0 : i32
    return %arg0, %c0_i32 : i32, i32
  }
  func.func @transform_2(%arg0: i32) -> (i32, i32) {
    %c0_i32 = arith.constant 0 : i32
    %c0_i32_0 = arith.constant 0 : i32
    %c0_i32_1 = arith.constant 0 : i32
    return %c0_i32, %c0_i32_0 : i32, i32
  }
  func.func @transform_3(%arg0: i32) -> (i32, i32) {
    %c0_i32 = arith.constant 0 : i32
    %c0_i32_0 = arith.constant 0 : i32
    %c0_i32_1 = arith.constant 0 : i32
    return %c0_i32, %c0_i32_0 : i32, i32
  }
  func.func @transform_4(%arg0: i32) -> (i32, i32) {
    %c0_i32 = arith.constant 0 : i32
    %c0_i32_0 = arith.constant 0 : i32
    %c0_i32_1 = arith.constant 0 : i32
    return %c0_i32, %c0_i32_0 : i32, i32
  }
  func.func @transform_5(%arg0: i32) -> (i32, i32) {
    %c0_i32 = arith.constant 0 : i32
    %c0_i32_0 = arith.constant 0 : i32
    %c0_i32_1 = arith.constant 0 : i32
    return %c0_i32, %c0_i32_0 : i32, i32
  }
  func.func @transform_6(%arg0: i32) -> (i32, i32) {
    %c0_i32 = arith.constant 0 : i32
    %c0_i32_0 = arith.constant 0 : i32
    %c0_i32_1 = arith.constant 0 : i32
    return %c0_i32, %c0_i32_0 : i32, i32
  }
  func.func @transform_7(%arg0: i32) -> (i32, i32) {
    %c0_i32 = arith.constant 0 : i32
    %c0_i32_0 = arith.constant 0 : i32
    %c0_i32_1 = arith.constant 0 : i32
    return %c0_i32, %c0_i32_0 : i32, i32
  }
  func.func @transform_8(%arg0: i32) -> (i32, i32) {
    %c0_i32 = arith.constant 0 : i32
    %c0_i32_0 = arith.constant 0 : i32
    %c0_i32_1 = arith.constant 0 : i32
    return %c0_i32, %c0_i32_0 : i32, i32
  }
  func.func @transform_9(%arg0: i32) -> (i32, i32) {
    %c0_i32 = arith.constant 0 : i32
    %c0_i32_0 = arith.constant 0 : i32
    %c0_i32_1 = arith.constant 0 : i32
    return %c0_i32, %c0_i32_0 : i32, i32
  }
  func.func @transform_10(%arg0: i32) -> (i32, i32) {
    %c0_i32 = arith.constant 0 : i32
    %c0_i32_0 = arith.constant 0 : i32
    return %arg0, %c0_i32 : i32, i32
  }
}

</mosaic_0001>

<bundles_post_ra>
// kernel: decision_transformer_forward.16
= control target key start
LH: loop header
LB: loop body
LE: loop exit
PB: predicated region body
PF: predicated region fallthrough
CT: control target
= control target key end

     0   :  { %vm39_vm0 = vcmask 261120   ;;  %s492_s1 = inlined_call_operand.vmem [shape: f32[32,128], index: 1, kind: input, shape index: {}]   ;;  %s493_s0 = inlined_call_operand.vmem [shape: f32[16,32], index: 0, kind: input, shape index: {}]   ;;  %s494_s3 = inlined_call_operand.vmem [shape: f32[128,32], index: 3, kind: input, shape index: {}]   ;;  %s495_s2 = inlined_call_operand.vmem [shape: f32[1,128], index: 2, kind: input, shape index: {}]   ;;  %s496_s4 = inlined_call_operand.vmem [shape: f32[1,32], index: 4, kind: input, shape index: {}]   ;;  %s497_s5 = inlined_call_operand.vmem [shape: f32[1,32], index: 5, kind: input, shape index: {}]   ;;  %s498_s6 = inlined_call_operand.vmem [shape: f32[1,32], index: 6, kind: input, shape index: {}]   ;;  %s499_s7 = inlined_call_operand.vmem [shape: f32[16,32], index: 7, kind: output, shape index: {}]  }
   0x1   :  { %v31_v0 = vld [vmem:[%s492_s1 + $0x18] sm:$0xff]  ;;  %v30_v1 = vld [vmem:[%s492_s1 + $0x10] sm:$0xff]  ;;  %v405_v2 = vld [vmem:[%s493_s0] sm:$0xff] }
   0x2   :  { %306 = vmatprep.subr.mxu0 %v31_v0  ;;  %v29_v3 = vld [vmem:[%s492_s1 + $0x8] sm:$0xff]  ;;  %314 = vmatprep.mubr.msk.f32.mxu0 %vm39_vm0, %v405_v2  ;;  %v138_v4 = vld [vmem:[%s494_s3 + $0x78] sm:$0xff]  ;;  %v137_v5 = vld [vmem:[%s494_s3 + $0x70] sm:$0xff] }
   0x3   :  { %307 = vmatpush3.msra.mxu0 %v31_v0  ;;  %317 = vmatprep.subr.mxu1 %v138_v4  ;;  %v28_v6 = vld [vmem:[%s492_s1] sm:$0xff]  ;;  %v136_v7 = vld [vmem:[%s494_s3 + $0x68] sm:$0xff]  ;;  %v134_v10 = vld [vmem:[%s494_s3 + $0x58] sm:$0xff] }
   0x4   :  { %308 = vmatprep.subr.mxu0 %v30_v1  ;;  %318 = vmatpush3.msra.mxu1 %v138_v4  ;;  %v27_v8 = vld [vmem:[%s493_s0 + $0x8] sm:$0xff]  ;;  %v135_v9 = vld [vmem:[%s494_s3 + $0x60] sm:$0xff]  ;;  %v133_v11 = vld [vmem:[%s494_s3 + $0x50] sm:$0xff] }
   0x5   :  { %309 = vmatpush3.msra.mxu0 %v30_v1  ;;  %319 = vmatprep.subr.mxu1 %v137_v5  ;;  %v132_v12 = vld [vmem:[%s494_s3 + $0x48] sm:$0xff]  ;;  %v131_v13 = vld [vmem:[%s494_s3 + $0x40] sm:$0xff]  ;;  %v130_v14 = vld [vmem:[%s494_s3 + $0x38] sm:$0xff] }
   0x6   :  { %310 = vmatprep.subr.mxu0 %v29_v3  ;;  %320 = vmatpush3.msra.mxu1 %v137_v5  ;;  %v129_v15 = vld [vmem:[%s494_s3 + $0x30] sm:$0xff]  ;;  %v128_v16 = vld [vmem:[%s494_s3 + $0x28] sm:$0xff]  ;;  %v127_v17 = vld [vmem:[%s494_s3 + $0x20] sm:$0xff] }
   0x7   :  { %311 = vmatpush3.msra.mxu0 %v29_v3  ;;  %321 = vmatprep.subr.mxu1 %v136_v7  ;;  %v126_v18 = vld [vmem:[%s494_s3 + $0x18] sm:$0xff]  ;;  %v125_v19 = vld [vmem:[%s494_s3 + $0x10] sm:$0xff]  ;;  %v124_v20 = vld [vmem:[%s494_s3 + $0x8] sm:$0xff] }
   0x8   :  { %312 = vmatprep.subr.mxu0 %v28_v6  ;;  %322 = vmatpush3.msra.mxu1 %v136_v7  ;;  %v123_v21 = vld [vmem:[%s494_s3] sm:$0xff] }
   0x9   :  { %313 = vmatpush3.msra.mxu0 %v28_v6  ;;  %323 = vmatprep.subr.mxu1 %v135_v9  ;;  %v276_v22 = vld [vmem:[%s495_s2] ss:$0 sm:$0xff] }
   0xa   :  { %315 = vmatmul.mubr.msk.f32.vlgmr.msra.gmra.mxu0 %vm39_vm0, %v27_v8  ;;  %324 = vmatpush3.msra.mxu1 %v135_v9  ;;  %v279_v33 = vld [vmem:[%s496_s4] ss:$0 sm:$0xff] }
   0xb   :  { %325 = vmatprep.subr.mxu1 %v134_v10  ;;  %v280_v55 = vld [vmem:[%s497_s5] ss:$0 sm:$0xff] }
   0xc   :  { %326 = vmatpush3.msra.mxu1 %v134_v10  ;;  %v281_v57 = vld [vmem:[%s498_s6] ss:$0 sm:$0xff] }
   0xd   :  { %327 = vmatprep.subr.mxu1 %v133_v11 }
   0xe   :  { %328 = vmatpush3.msra.mxu1 %v133_v11 }
   0xf   :  { %329 = vmatprep.subr.mxu1 %v132_v12 }
  0x10   :  { %330 = vmatpush3.msra.mxu1 %v132_v12 }
  0x11   :  { %331 = vmatprep.subr.mxu1 %v131_v13 }
  0x12   :  { %332 = vmatpush3.msra.mxu1 %v131_v13 }
  0x13   :  { %333 = vmatprep.subr.mxu1 %v130_v14 }
  0x14   :  { %334 = vmatpush3.msra.mxu1 %v130_v14 }
  0x15   :  { %335 = vmatprep.subr.mxu1 %v129_v15 }
  0x16   :  { %336 = vmatpush3.msra.mxu1 %v129_v15 }
  0x17   :  { %337 = vmatprep.subr.mxu1 %v128_v16 }
  0x18   :  { %338 = vmatpush3.msra.mxu1 %v128_v16 }
  0x19   :  { %339 = vmatprep.subr.mxu1 %v127_v17 }
  0x1a   :  { %340 = vmatpush3.msra.mxu1 %v127_v17 }
  0x1b   :  { %341 = vmatprep.subr.mxu1 %v126_v18 }
  0x1c   :  { %342 = vmatpush3.msra.mxu1 %v126_v18 }
  0x1d   :  { %343 = vmatprep.subr.mxu1 %v125_v19 }
  0x1e   :  { %344 = vmatpush3.msra.mxu1 %v125_v19 }
  0x1f   :  { %345 = vmatprep.subr.mxu1 %v124_v20 }
  0x20   :  { %346 = vmatpush3.msra.mxu1 %v124_v20 }
  0x21   :  { %347 = vmatprep.subr.mxu1 %v123_v21 }
  0x22   :  { %348 = vmatpush3.msra.mxu1 %v123_v21 }
  0xca   :  { %v316_v23 = vpop.f32.mrf.mxu0 }
  0xcb   :  { %v118_v24 = vadd.f32 %v316_v23, %v276_v22 }
  0xcc   :  { %v112_v25 = vpop.f32.mrf.mxu0 }
  0xcd   :  { %v113_v26 = vadd.f32 %v276_v22, %v112_v25  ;;  %v122_v28 = vmax.f32 %v118_v24, 0.0 }
  0xcf   :  { %v121_v27 = vmax.f32 %v113_v26, 0.0 }
  0xd1   :  { %349 = vmatprep.mubr.f32.mxu1 %v121_v27 }
  0xd2   :  { %350 = vmatmul.mubr.f32.vlgmr.msra.gmra.mxu1 %v122_v28 }
 0x192   :  { %v351_v29 = vpop.f32.mrf.mxu1 }
 0x193   :  { %v215_v31 = vadd.f32 %v351_v29, %v27_v8 }
 0x194   :  { %v205_v30 = vpop.f32.mrf.mxu1 }
 0x195   :  { %v214_v32 = vadd.f32 %v205_v30, %v405_v2  ;;  %v224_v36 = vadd.f32 %v279_v33, %v215_v31 }
 0x197   :  { %v223_v34 = vadd.f32 %v279_v33, %v214_v32  ;;  %v230_v37 = vsel %vm39_vm0, %v224_v36, 0.0 }
 0x199   :  { %v227_v35 = vsel %vm39_vm0, %v223_v34, 0.0 }
 0x19a   :  { %228 = vadd.xlane.f32.xlu0 %v227_v35 }
 0x19e   :  { %231 = vadd.xlane.f32.xlu0 %v230_v37 }
 0x223   :  { %v229_v38 = vpop.xlane.xlu0 %228 }
 0x224   :  { %v234_v39 = vmul.f32 0.03125, %v229_v38 }
 0x226   :  { %v236_v40 = vsub.f32 %v223_v34, %v234_v39 }
 0x227   :  { %v232_v41 = vpop.xlane.xlu0 %231 }
 0x228   :  { %v235_v42 = vmul.f32 0.03125, %v232_v41  ;;  %v238_v43 = vmul.f32 %v236_v40, %v236_v40 }
 0x22a   :  { %v237_v44 = vsub.f32 %v224_v36, %v235_v42  ;;  %v240_v45 = vsel %vm39_vm0, %v238_v43, 0.0 }
 0x22b   :  { %241 = vadd.xlane.f32.xlu1 %v240_v45 }
 0x22c   :  { %v239_v46 = vmul.f32 %v237_v44, %v237_v44 }
 0x22e   :  { %v243_v47 = vsel %vm39_vm0, %v239_v46, 0.0 }
 0x22f   :  { %244 = vadd.xlane.f32.xlu1 %v243_v47 }
 0x2b4   :  { %v242_v48 = vpop.xlane.xlu1 %241 }
 0x2b5   :  { %v246_v49 = vmul.f32 0.03125, %v242_v48 }
 0x2b7   :  { %v248_v50 = vadd.f32 1e-05, %v246_v49 }
 0x2b8   :  { %v245_v51 = vpop.xlane.xlu1 %244 }
 0x2b9   :  { %352 = vrsqrt.f32 %v248_v50  ;;  %v247_v52 = vmul.f32 0.03125, %v245_v51 }
 0x2bb   :  { %v249_v53 = vadd.f32 1e-05, %v247_v52 }
 0x2bd   :  { %354 = vrsqrt.f32 %v249_v53 }
 0x2c6   :  { %v353_v54 = vpop.eup %352 }
 0x2c7   :  { %v252_v56 = vmul.f32 %v353_v54, %v236_v40 }
 0x2c9   :  { %v260_v58 = vmul.f32 %v280_v55, %v252_v56 }
 0x2ca   :  { %v355_v59 = vpop.eup %354 }
 0x2cb   :  { %v268_v60 = vadd.f32 %v281_v57, %v260_v58  ;;  %v253_v61 = vmul.f32 %v355_v59, %v237_v44 }
 0x2cd   :  { %270 = vst.msk [vmem:[%s499_s7] sm:$0xff] %vm39_vm0, %v268_v60  ;;  %v261_v62 = vmul.f32 %v280_v55, %v253_v61 }
 0x2cf   :  { %v269_v63 = vadd.f32 %v281_v57, %v261_v62 }
 0x2d1   :  { %271 = vst.msk [vmem:[%s499_s7 + $0x8] sm:$0xff] %vm39_vm0, %v269_v63 }

// kernel: decision_transformer_forward.14
= control target key start
LH: loop header
LB: loop body
LE: loop exit
PB: predicated region body
PF: predicated region fallthrough
CT: control target
= control target key end

     0   :  { %vm40_vm0 = vcmask 130048   ;;  %v187_v3 = vmov 0   ;;  %vm162_vm1 = vcmask 261120   ;;  %s280_s4 = inlined_call_operand.vmem [shape: f32[16,32], index: 4, kind: input, shape index: {}]   ;;  %s281_s0 = inlined_call_operand.vmem [shape: f32[16,16], index: 0, kind: input, shape index: {}]   ;;  %s282_s3 = inlined_call_operand.vmem [shape: f32[16,1], index: 3, kind: input, shape index: {}]   ;;  %s283_s6 = inlined_call_operand.vmem [shape: f32[1,32], index: 6, kind: input, shape index: {}]   ;;  %s284_s5 = inlined_call_operand.vmem [shape: f32[1,32], index: 5, kind: input, shape index: {}]   ;;  %s285_s1 = inlined_call_operand.vmem [shape: f32[16,32], index: 1, kind: input, shape index: {}]   ;;  %s286_s7 = inlined_call_operand.vmem [shape: f32[1,32], index: 7, kind: input, shape index: {}]   ;;  %s287_s2 = inlined_call_operand.vmem [shape: f32[16,32], index: 2, kind: input, shape index: {}]   ;;  %s288_s8 = inlined_call_operand.vmem [shape: f32[16,32], index: 8, kind: output, shape index: {}]  }
   0x1   :  { %v32_v0 = vld [vmem:[%s280_s4 + $0x8] sm:$0xff]  ;;  %v31_v1 = vld [vmem:[%s280_s4] sm:$0xff]  ;;  %186 = vset.pattern.permute.xlu0 %v187_v3 }
   0x2   :  { %v29_v2 = vld [vmem:[%s281_s0] sm:$0xff]  ;;  %178 = vmatprep.subr.mxu0 %v32_v0  ;;  %v30_v5 = vld [vmem:[%s281_s0 + $0x8] sm:$0xff] }
   0x3   :  { %182 = vmatprep.mubr.msk.f32.mxu0 %vm40_vm0, %v29_v2  ;;  %v122_v4 = vld [vmem:[%s282_s3] sm:$0xff]  ;;  %179 = vmatpush3.msra.mxu0 %v32_v0  ;;  %v123_v6 = vld [vmem:[%s282_s3 + $0x8] sm:$0xff] }
   0x4   :  { %127 = vperm.xlu0 %186, %v122_v4   ;;  %180 = vmatprep.subr.mxu0 %v31_v1  ;;  %v172_v8 = vld [vmem:[%s283_s6] ss:$0 sm:$0xff]  ;;  %v153_v12 = vld [vmem:[%s285_s1 + $0x8] sm:$0xff] }
   0x5   :  { %181 = vmatpush3.msra.mxu0 %v31_v1  ;;  %v169_v10 = vld [vmem:[%s284_s5] ss:$0 sm:$0xff]  ;;  %v157_v16 = vld [vmem:[%s287_s2 + $0x8] sm:$0xff] }
   0x6   :  { %183 = vmatmul.mubr.msk.f32.vlgmr.msra.gmra.mxu0 %vm40_vm0, %v30_v5  ;;  %v173_v15 = vld [vmem:[%s286_s7] ss:$0 sm:$0xff] }
   0x7   :  { %v152_v18 = vld [vmem:[%s285_s1] sm:$0xff] }
   0x8   :  { %132 = vperm.xlu0 %186, %v123_v6   ;;  %v156_v22 = vld [vmem:[%s287_s2] sm:$0xff] }
  0x7f   :  { %v128_v7 = vpop.permute.xlu0 %127 }
  0x80   :  { %v141_v19 = vmul.f32 %v172_v8, %v128_v7 }
  0x82   :  { %v150_v26 = vadd.f32 %v173_v15, %v141_v19 }
  0x83   :  { %v133_v9 = vpop.permute.xlu0 %132 }
  0x84   :  { %v142_v13 = vmul.f32 %v172_v8, %v133_v9 }
  0x86   :  { %v151_v23 = vadd.f32 %v173_v15, %v142_v13 }
  0xc6   :  { %v184_v11 = vpop.f32.mrf.mxu0 }
  0xc7   :  { %v119_v14 = vadd.f32 %v184_v11, %v169_v10 }
  0xc8   :  { %v113_v17 = vpop.f32.mrf.mxu0 }
  0xc9   :  { %v155_v20 = vadd.f32 %v153_v12, %v119_v14  ;;  %v114_v21 = vadd.f32 %v169_v10, %v113_v17 }
  0xcb   :  { %v159_v24 = vadd.f32 %v157_v16, %v155_v20  ;;  %v154_v25 = vadd.f32 %v152_v18, %v114_v21 }
  0xcd   :  { %v161_v27 = vadd.f32 %v159_v24, %v151_v23  ;;  %v158_v28 = vadd.f32 %v156_v22, %v154_v25 }
  0xcf   :  { %164 = vst.msk [vmem:[%s288_s8 + $0x8] sm:$0xff] %vm162_vm1, %v161_v27  ;;  %v160_v29 = vadd.f32 %v158_v28, %v150_v26 }
  0xd1   :  { %163 = vst.msk [vmem:[%s288_s8] sm:$0xff] %vm162_vm1, %v160_v29 }

// kernel: decision_transformer_forward.19
= control target key start
LH: loop header
LB: loop body
LE: loop exit
PB: predicated region body
PF: predicated region fallthrough
CT: control target
= control target key end

     0   :  { %vm18_vm0 = vcmask 261120   ;;  %s118_s0 = inlined_call_operand.vmem [shape: f32[16,32], index: 0, kind: input, shape index: {}]   ;;  %s119_s1 = inlined_call_operand.vmem [shape: f32[1,32], index: 1, kind: input, shape index: {}]   ;;  %s120_s2 = inlined_call_operand.vmem [shape: f32[1,32], index: 2, kind: input, shape index: {}]   ;;  %s121_s3 = inlined_call_operand.vmem [shape: f32[16,32], index: 3, kind: output, shape index: {}]  }
   0x1   :  { %v14_v0 = vld [vmem:[%s118_s0] sm:$0xff]  ;;  %v15_v1 = vld [vmem:[%s118_s0 + $0x8] sm:$0xff] }
   0x2   :  { %v19_v2 = vsel %vm18_vm0, %v14_v0, 0.0  ;;  %v22_v3 = vsel %vm18_vm0, %v15_v1, 0.0  ;;  %v68_v21 = vld [vmem:[%s119_s1] ss:$0 sm:$0xff] }
   0x3   :  { %20 = vadd.xlane.f32.xlu0 %v19_v2  ;;  %v69_v23 = vld [vmem:[%s120_s2] ss:$0 sm:$0xff] }
   0x7   :  { %23 = vadd.xlane.f32.xlu0 %v22_v3 }
  0x8c   :  { %v21_v4 = vpop.xlane.xlu0 %20 }
  0x8d   :  { %v26_v5 = vmul.f32 0.03125, %v21_v4 }
  0x8f   :  { %v28_v6 = vsub.f32 %v14_v0, %v26_v5 }
  0x90   :  { %v24_v7 = vpop.xlane.xlu0 %23 }
  0x91   :  { %v27_v8 = vmul.f32 0.03125, %v24_v7  ;;  %v30_v9 = vmul.f32 %v28_v6, %v28_v6 }
  0x93   :  { %v29_v10 = vsub.f32 %v15_v1, %v27_v8  ;;  %v32_v11 = vsel %vm18_vm0, %v30_v9, 0.0 }
  0x94   :  { %33 = vadd.xlane.f32.xlu1 %v32_v11 }
  0x95   :  { %v31_v12 = vmul.f32 %v29_v10, %v29_v10 }
  0x97   :  { %v35_v13 = vsel %vm18_vm0, %v31_v12, 0.0 }
  0x98   :  { %36 = vadd.xlane.f32.xlu1 %v35_v13 }
 0x11d   :  { %v34_v14 = vpop.xlane.xlu1 %33 }
 0x11e   :  { %v38_v15 = vmul.f32 0.03125, %v34_v14 }
 0x120   :  { %v40_v16 = vadd.f32 1e-05, %v38_v15 }
 0x121   :  { %v37_v17 = vpop.xlane.xlu1 %36 }
 0x122   :  { %70 = vrsqrt.f32 %v40_v16  ;;  %v39_v18 = vmul.f32 0.03125, %v37_v17 }
 0x124   :  { %v41_v19 = vadd.f32 1e-05, %v39_v18 }
 0x126   :  { %72 = vrsqrt.f32 %v41_v19 }
 0x12f   :  { %v71_v20 = vpop.eup %70 }
 0x130   :  { %v44_v22 = vmul.f32 %v71_v20, %v28_v6 }
 0x132   :  { %v52_v24 = vmul.f32 %v68_v21, %v44_v22 }
 0x133   :  { %v73_v25 = vpop.eup %72 }
 0x134   :  { %v60_v26 = vadd.f32 %v69_v23, %v52_v24  ;;  %v45_v27 = vmul.f32 %v73_v25, %v29_v10 }
 0x136   :  { %62 = vst.msk [vmem:[%s121_s3] sm:$0xff] %vm18_vm0, %v60_v26  ;;  %v53_v28 = vmul.f32 %v68_v21, %v45_v27 }
 0x138   :  { %v61_v29 = vadd.f32 %v69_v23, %v53_v28 }
 0x13a   :  { %63 = vst.msk [vmem:[%s121_s3 + $0x8] sm:$0xff] %vm18_vm0, %v61_v29 }

// kernel: decision_transformer_forward.27
= control target key start
LH: loop header
LB: loop body
LE: loop exit
PB: predicated region body
PF: predicated region fallthrough
CT: control target
= control target key end

     0   :  { %vm27_vm0 = vcmask 261120   ;;  %s184_s1 = inlined_call_operand.vmem [shape: f32[32,128], index: 1, kind: input, shape index: {}]   ;;  %s185_s0 = inlined_call_operand.vmem [shape: f32[16,32], index: 0, kind: input, shape index: {}]   ;;  %s186_s2 = inlined_call_operand.vmem [shape: f32[1,128], index: 2, kind: input, shape index: {}]   ;;  %s187_s3 = inlined_call_operand.vmem [shape: f32[16,128], index: 3, kind: output, shape index: {}]  }
   0x1   :  { %v19_v0 = vld [vmem:[%s184_s1 + $0x18] sm:$0xff]  ;;  %v18_v1 = vld [vmem:[%s184_s1 + $0x10] sm:$0xff]  ;;  %v14_v2 = vld [vmem:[%s185_s0] sm:$0xff] }
   0x2   :  { %124 = vmatprep.subr.mxu0 %v19_v0  ;;  %v17_v3 = vld [vmem:[%s184_s1 + $0x8] sm:$0xff]  ;;  %132 = vmatprep.mubr.msk.f32.mxu0 %vm27_vm0, %v14_v2  ;;  %v16_v4 = vld [vmem:[%s184_s1] sm:$0xff] }
   0x3   :  { %125 = vmatpush3.msra.mxu0 %v19_v0  ;;  %v15_v5 = vld [vmem:[%s185_s0 + $0x8] sm:$0xff]  ;;  %v115_v6 = vld [vmem:[%s186_s2] ss:$0 sm:$0xff] }
   0x4   :  { %126 = vmatprep.subr.mxu0 %v18_v1 }
   0x5   :  { %127 = vmatpush3.msra.mxu0 %v18_v1 }
   0x6   :  { %128 = vmatprep.subr.mxu0 %v17_v3 }
   0x7   :  { %129 = vmatpush3.msra.mxu0 %v17_v3 }
   0x8   :  { %130 = vmatprep.subr.mxu0 %v16_v4 }
   0x9   :  { %131 = vmatpush3.msra.mxu0 %v16_v4 }
   0xa   :  { %133 = vmatmul.mubr.msk.f32.vlgmr.msra.gmra.mxu0 %vm27_vm0, %v15_v5 }
  0xca   :  { %v134_v7 = vpop.f32.mrf.mxu0 }
  0xcb   :  { %v106_v8 = vadd.f32 %v134_v7, %v115_v6 }
  0xcc   :  { %v100_v9 = vpop.f32.mrf.mxu0 }
  0xcd   :  { %110 = vst [vmem:[%s187_s3 + $0x8] sm:$0xff] %v106_v8  ;;  %v101_v10 = vadd.f32 %v115_v6, %v100_v9 }
  0xcf   :  { %109 = vst [vmem:[%s187_s3] sm:$0xff] %v101_v10 }

// kernel: decision_transformer_forward.15
= control target key start
LH: loop header
LB: loop body
LE: loop exit
PB: predicated region body
PF: predicated region fallthrough
CT: control target
= control target key end

     0   :  { %s1645_s24 = smov 0   ;;  %s1793_s0 = inlined_call_operand.vmem [shape: f32[16,32], index: 0, kind: input, shape index: {}]   ;;  %s1794_s1 = inlined_call_operand.vmem [shape: f32[32,96], index: 1, kind: input, shape index: {}]   ;;  %s1795_s2 = inlined_call_operand.vmem [shape: f32[1,96], index: 2, kind: input, shape index: {}]   ;;  %s1796_s3 = inlined_call_operand.vmem [shape: f32[32,32], index: 3, kind: input, shape index: {}]   ;;  %s1797_s4 = inlined_call_operand.vmem [shape: f32[1,32], index: 4, kind: input, shape index: {}]   ;;  %s1798_s5 = inlined_call_operand.vmem [shape: f32[1,32], index: 5, kind: input, shape index: {}]   ;;  %s1799_s6 = inlined_call_operand.vmem [shape: f32[1,32], index: 6, kind: input, shape index: {}]   ;;  %s1800_s7 = inlined_call_operand.vmem [shape: f32[16,32], index: 7, kind: output, shape index: {}]  }
   0x1 LB: > { %s1415_s25 = sadd.s32 4294967295, %s1590_s24   ;;  %p1419_p0 = scmp.ge.s32.totalorder %s1590_s24, 1  ;;  %s1590_s24 = sphi %s1645_s24, %s17_s24  }
   0x2   : > { %p236_p1 = scmp.lt.s32.totalorder %s1590_s24, 3 }
   0x4   : > { %p237_p2 = pnand %p1419_p0, %p236_p1 }
   0x5   : > { %p266_p3 = scmp.lt.s32.totalorder (!%p237_p2), %s1415_s25, 1  ;;  %s1594_s17 = smov (!%p237_p2), 120  }
   0x6   : > { %240 = sbr.rel (%p237_p2) target bundleno = 2760 (0xac8), region = 48  ;;  %s1595_s18 = smov (!%p237_p2), 96  }
   0x7   : > { %s1596_s19 = smov (!%p237_p2), 88   ;;  %s1597_s20 = smov (!%p237_p2), 56  }
   0x8   : > { %s1598_s21 = smov (!%p237_p2), 64   ;;  %s1599_s22 = smov (!%p237_p2), 80  }
   0x9   : > { %s1600_s23 = smov (!%p237_p2), 112   ;;  %s1601_s30 = smov (!%p237_p2), 72  }
   0xa   : > { %s1602_s8 = smov (!%p237_p2), 104   ;;  %s1603_s10 = smov (!%p237_p2), 48  }
   0xb   : > { %v278_v0 = vld [vmem:[%s1794_s1 + $0x18] sm:$0xff]  ;;  %v1592_v1 = vmov 0.0   ;;  %v277_v2 = vld [vmem:[%s1794_s1 + $0x10] sm:$0xff]  ;;  %vm1593_vm0 = vmmov 0   ;;  %s1802_s25 = smov (!%p266_p3, %s1415_s25), 1  ;;  %v276_v3 = vld [vmem:[%s1794_s1 + $0x8] sm:$0xff] }
   0xc   : > { %1474 = vmatprep.subr.mxu0 %v1592_v1  ;;  %1482 = vmatprep.mubr.msk.f32.mxu0 %vm1593_vm0, %v1592_v1  ;;  %s1420_s9 = sshll.u32 %s1802_s25, 3  ;;  %v275_v4 = vld [vmem:[%s1794_s1] sm:$0xff]  ;;  %vm286_vm1 = vcmask 261120   ;;  %vm367_vm2 = vcmask 64512   ;;  %v361_v40 = vld [vmem:[%s1796_s3 + $0x8] sm:$0xff]  ;;  %s1604_s13 = smov 40  }
   0xd   : > { %1475 = vmatpush3.msra.mxu0 %v278_v0  ;;  %1485 = vmatprep.subr.mxu1 %v1592_v1  ;;  %s269_s14 = scalar_lea.vmem %s1793_s0, %s1420_s9  ;;  %v1422_v6 = vld [vmem:[%s1795_s2] ss:$0 sm:$0xff]  ;;  %s273_s26 = scalar_lea.vmem %s1800_s7, %s1420_s9 }
   0xe   : > { %1476 = vmatprep.subr.mxu0 %v1592_v1  ;;  %1487 = vmatprep.mubr.msk.f32.mxu1 %vm1593_vm0, %v1592_v1  ;;  %v1681_v5 = vld [vmem:[%s269_s14] sm:$0xff] }
   0xf   : > { %1477 = vmatpush3.msra.mxu0 %v277_v2  ;;  %v360_v39 = vld [vmem:[%s1796_s3] sm:$0xff] }
  0x10   : > { %1478 = vmatprep.subr.mxu0 %v1592_v1 }
  0x11   : > { %1479 = vmatpush3.msra.mxu0 %v276_v3 }
  0x12   : > { %1480 = vmatprep.subr.mxu0 %v1592_v1 }
  0x13   : > { %1481 = vmatpush3.msra.mxu0 %v275_v4  ;;  %v362_v4 = vld [vmem:[%s1796_s3 + $0x10] sm:$0xff] }
  0x14   : > { %1483 = vmatmul.mubr.msk.f32.vlgmr.msra.gmra.mxu0 %vm286_vm1, %v1681_v5  ;;  %1495 = vmatprep.subr.mxu0 %v1592_v1 }
  0x15   : > { %1497 = vmatprep.mubr.msk.f32.mxu0 %vm1593_vm0, %v1592_v1 }
  0xd4   : > { %v356_v7 = vpop.f32.mrf.mxu0 }
  0xd5   : > { %v1692_v8 = vadd.f32 %v1422_v6, %v356_v7 }
  0xd6   : > { %v1484_v9 = vpop.f32.mrf.mxu0 }
  0xd7   : > { %530 = vrot.lane.b32.xlu1 %v1692_v8, %s1594_s17  ;;  %365 = vrot.lane.b32.xlu0 %v1692_v8, %s1595_s18 }
  0xdb   : > { %532 = vrot.lane.b32.xlu0 %v1692_v8, %s1596_s19 }
 0x149   : > { %v366_v10 = vpop.permute.xlu0 %365  ;;  %v531_v12 = vpop.permute.xlu1 %530 }
 0x14a   : > { %1486 = vmatpush3.xpose.msk.msra.mxu1 %vm367_vm2, %v366_v10 }
 0x14b   : > { %1490 = vmatprep.subr.mxu1 %v1592_v1 }
 0x14d   : > { %1488 = vmatmul.mubr.msk.f32.vlgmr.msra.gmra.mxu1 %vm367_vm2, %v1692_v8  ;;  %v533_v11 = vpop.permute.xlu0 %532 }
 0x14e   : > { %1496 = vmatpush3.xpose.msk.msra.mxu0 %vm367_vm2, %v533_v11  ;;  %1492 = vmatprep.mubr.msk.f32.mxu1 %vm1593_vm0, %v1592_v1 }
 0x14f   : > { %1505 = vmatprep.subr.mxu0 %v1592_v1 }
 0x151   : > { %1498 = vmatmul.mubr.msk.f32.vlgmr.msra.gmra.mxu0 %vm367_vm2, %v531_v12 }
 0x152   : > { %1507 = vmatprep.mubr.msk.f32.mxu0 %vm1593_vm0, %v1592_v1  ;;  %1506 = vmatpush3.msra.mxu0 %v361_v40 }
 0x153   : > { %1515 = vmatprep.subr.mxu0 %v1592_v1 }
 0x20d   : > { %v438_v13 = vpop.f32.mrf.mxu1 }
 0x20e   : > { %v442_v14 = vmul.f32 0.35355338, %v438_v13 }
 0x20f   : > { %v1489_v15 = vpop.f32.mrf.mxu1 }
 0x210   : > { %v443_v16 = vsel %vm367_vm2, %v442_v14, -inf }
 0x211   : > { %444 = vmax.xlane.f32.xlu1 %v443_v16  ;;  %v604_v17 = vpop.f32.mrf.mxu0 }
 0x212   : > { %v608_v18 = vmul.f32 0.35355338, %v604_v17 }
 0x213   : > { %v1499_v19 = vpop.f32.mrf.mxu0 }
 0x214   : > { %v609_v20 = vsel %vm367_vm2, %v608_v18, -inf }
 0x215   : > { %610 = vmax.xlane.f32.xlu0 %v609_v20 }
 0x29a   : > { %v445_v21 = vpop.xlane.xlu1 %444 }
 0x29b   : > { %v446_v22 = vsub.f32 %v442_v14, %v445_v21 }
 0x29d   : > { %v447_v23 = vmul.f32 1.442695, %v446_v22 }
 0x29e   : > { %v611_v24 = vpop.xlane.xlu0 %610 }
 0x29f   : > { %1566 = vpow2.f32 %v447_v23  ;;  %v612_v25 = vsub.f32 %v608_v18, %v611_v24 }
 0x2a1   : > { %v613_v26 = vmul.f32 1.442695, %v612_v25 }
 0x2a3   : > { %1568 = vpow2.f32 %v613_v26 }
 0x2ac   : > { %v1567_v27 = vpop.eup %1566 }
 0x2ad   : > { %v449_v28 = vsel %vm367_vm2, %v1567_v27, 0.0 }
 0x2ae   : > { %450 = vadd.xlane.f32.xlu0 %v449_v28 }
 0x2b0   : > { %v1569_v29 = vpop.eup %1568 }
 0x2b1   : > { %v615_v30 = vsel %vm367_vm2, %v1569_v29, 0.0 }
 0x2b2   : > { %616 = vadd.xlane.f32.xlu1 %v615_v30 }
 0x2c3   : > { %620 = vrot.lane.b32.xlu1 %v1692_v8, %s1597_s20 }
 0x2c4   : > { %454 = vrot.lane.b32.xlu0 %v1692_v8, %s1598_s21 }
 0x2c7   : > { %844 = vrot.lane.b32.xlu1 %v1692_v8, %s1599_s22 }
 0x2c8   : > { %842 = vrot.lane.b32.xlu0 %v1692_v8, %s1600_s23 }
 0x337   : > { %v451_v31 = vpop.xlane.xlu0 %450 }
 0x338   : > { %1570 = vrcp.f32 %v451_v31 }
 0x33b   : > { %v617_v32 = vpop.xlane.xlu1 %616  ;;  %v455_v33 = vpop.permute.xlu0 %454 }
 0x33c   : > { %1572 = vrcp.f32 %v617_v32  ;;  %1491 = vmatpush3.msra.mxu1 %v455_v33 }
 0x33d   : > { %1500 = vmatprep.subr.mxu1 %v1592_v1 }
 0x33f   : > { %v621_v36 = vpop.permute.xlu1 %620  ;;  %v843_v46 = vpop.permute.xlu0 %842 }
 0x343   : > { %v845_v44 = vpop.permute.xlu1 %844 }
 0x345   : > { %v1571_v34 = vpop.eup %1570 }
 0x346   : > { %v453_v35 = vmul.f32 %v1571_v34, %v1567_v27 }
 0x348   : > { %1493 = vmatmul.mubr.msk.f32.vlgmr.msra.gmra.mxu1 %vm367_vm2, %v453_v35 }
 0x349   : > { %v1573_v37 = vpop.eup %1572  ;;  %1501 = vmatpush3.msra.mxu1 %v621_v36  ;;  %1502 = vmatprep.mubr.msk.f32.mxu1 %vm1593_vm0, %v1592_v1 }
 0x34a   : > { %v619_v38 = vmul.f32 %v1573_v37, %v1569_v29  ;;  %1510 = vmatprep.subr.mxu1 %v1592_v1  ;;  %v1440_v29 = vld [vmem:[%s1797_s4] ss:$0 sm:$0xff] }
 0x34c   : > { %1503 = vmatmul.mubr.msk.f32.vlgmr.msra.gmra.mxu1 %vm367_vm2, %v619_v38 }
 0x34d   : > { %1512 = vmatprep.mubr.msk.f32.mxu1 %vm1593_vm0, %v1592_v1  ;;  %1511 = vmatpush3.msra.mxu1 %v360_v39 }
 0x34e   : > { %1520 = vmatprep.subr.mxu1 %v1592_v1 }
 0x408   : > { %v526_v41 = vpop.f32.mrf.mxu1 }
 0x409   : > { %1513 = vmatmul.mubr.msk.f32.vlgmr.msra.gmra.mxu1 %vm367_vm2, %v526_v41 }
 0x40a   : > { %v1494_v42 = vpop.f32.mrf.mxu1  ;;  %1522 = vmatprep.mubr.msk.f32.mxu1 %vm1593_vm0, %v1592_v1 }
 0x40c   : > { %v692_v43 = vpop.f32.mrf.mxu1 }
 0x40d   : > { %1508 = vmatmul.mubr.msk.f32.vlgmr.msra.gmra.mxu0 %vm367_vm2, %v692_v43  ;;  %v1442_v43 = vld [vmem:[%s1799_s6] ss:$0 sm:$0xff] }
 0x40e   : > { %1516 = vmatpush3.xpose.msk.msra.mxu0 %vm367_vm2, %v845_v44  ;;  %v1504_v45 = vpop.f32.mrf.mxu1  ;;  %1517 = vmatprep.mubr.msk.f32.mxu0 %vm1593_vm0, %v1592_v1 }
 0x40f   : > { %1525 = vmatprep.subr.mxu0 %v1592_v1 }
 0x411   : > { %1518 = vmatmul.mubr.msk.f32.vlgmr.msra.gmra.mxu0 %vm367_vm2, %v843_v46 }
 0x412   : > { %1527 = vmatprep.mubr.msk.f32.mxu0 %vm1593_vm0, %v1592_v1  ;;  %1526 = vmatpush3.msra.mxu0 %v362_v4 }
 0x413   : > { %1535 = vmatprep.subr.mxu0 %v1592_v1 }
 0x4c9   : > { %v838_v47 = vpop.f32.mrf.mxu1 }
 0x4cb   : > { %v1514_v48 = vpop.f32.mrf.mxu1 }
 0x4cd   : > { %v765_v49 = vpop.f32.mrf.mxu0 }
 0x4ce   : > { %v839_v50 = vadd.f32 %v838_v47, %v765_v49 }
 0x4cf   : > { %v1509_v51 = vpop.f32.mrf.mxu0 }
 0x4d1   : > { %v916_v52 = vpop.f32.mrf.mxu0 }
 0x4d2   : > { %v920_v53 = vmul.f32 0.35355338, %v916_v52 }
 0x4d3   : > { %v1519_v54 = vpop.f32.mrf.mxu0 }
 0x4d4   : > { %v921_v55 = vsel %vm367_vm2, %v920_v53, -inf }
 0x4d5   : > { %922 = vmax.xlane.f32.xlu1 %v921_v55 }
 0x4e6   : > { %1084 = vrot.lane.b32.xlu1 %v1692_v8, %s1601_s30 }
 0x4ea   : > { %1082 = vrot.lane.b32.xlu1 %v1692_v8, %s1602_s8 }
 0x55e   : > { %v923_v56 = vpop.xlane.xlu1 %922 }
 0x55f   : > { %v924_v57 = vsub.f32 %v920_v53, %v923_v56 }
 0x561   : > { %v925_v58 = vmul.f32 1.442695, %v924_v57 }
 0x562   : > { %v1085_v0 = vpop.permute.xlu1 %1084 }
 0x563   : > { %1574 = vpow2.f32 %v925_v58 }
 0x566   : > { %v1083_v3 = vpop.permute.xlu1 %1082 }
 0x570   : > { %v1575_v59 = vpop.eup %1574 }
 0x571   : > { %v927_v60 = vsel %vm367_vm2, %v1575_v59, 0.0 }
 0x572   : > { %928 = vadd.xlane.f32.xlu0 %v927_v60 }
 0x588   : > { %932 = vrot.lane.b32.xlu0 %v1692_v8, %s1603_s10 }
 0x5fb   : > { %v929_v61 = vpop.xlane.xlu0 %928 }
 0x5fc   : > { %1576 = vrcp.f32 %v929_v61 }
 0x5ff   : > { %v933_v62 = vpop.permute.xlu0 %932 }
 0x600   : > { %1521 = vmatpush3.msra.mxu1 %v933_v62 }
 0x601   : > { %1530 = vmatprep.subr.mxu1 %v1592_v1 }
 0x609   : > { %v1577_v63 = vpop.eup %1576 }
 0x60a   : > { %v931_v2 = vmul.f32 %v1577_v63, %v1575_v59 }
 0x60c   : > { %1523 = vmatmul.mubr.msk.f32.vlgmr.msra.gmra.mxu1 %vm367_vm2, %v931_v2 }
 0x60d   : > { %1531 = vmatpush3.xpose.msk.msra.mxu1 %vm367_vm2, %v1085_v0  ;;  %1532 = vmatprep.mubr.msk.f32.mxu1 %vm1593_vm0, %v1592_v1 }
 0x60e   : > { %1540 = vmatprep.subr.mxu1 %v1592_v1 }
 0x610   : > { %1533 = vmatmul.mubr.msk.f32.vlgmr.msra.gmra.mxu1 %vm367_vm2, %v1083_v3 }
 0x611   : > { %1542 = vmatprep.mubr.msk.f32.mxu1 %vm1593_vm0, %v1592_v1 }
 0x6cc   : > { %v1004_v6 = vpop.f32.mrf.mxu1 }
 0x6cd   : > { %1528 = vmatmul.mubr.msk.f32.vlgmr.msra.gmra.mxu0 %vm367_vm2, %v1004_v6 }
 0x6ce   : > { %v1524_v7 = vpop.f32.mrf.mxu1  ;;  %1537 = vmatprep.mubr.msk.f32.mxu0 %vm1593_vm0, %v1592_v1  ;;  %v363_v1 = vld [vmem:[%s1796_s3 + $0x18] sm:$0xff] }
 0x6cf   : > { %1541 = vmatpush3.msra.mxu1 %v363_v1 }
 0x6d0   : > { %v1156_v9 = vpop.f32.mrf.mxu1 }
 0x6d1   : > { %v1160_v10 = vmul.f32 0.35355338, %v1156_v9 }
 0x6d2   : > { %v1534_v11 = vpop.f32.mrf.mxu1 }
 0x6d3   : > { %v1161_v12 = vsel %vm367_vm2, %v1160_v10, -inf }
 0x6d4   : > { %1162 = vmax.xlane.f32.xlu0 %v1161_v12 }
 0x6ea   : > { %1172 = vrot.lane.b32.xlu0 %v1692_v8, %s1604_s13 }
 0x75d   : > { %v1163_v13 = vpop.xlane.xlu0 %1162 }
 0x75e   : > { %v1164_v14 = vsub.f32 %v1160_v10, %v1163_v13 }
 0x760   : > { %v1165_v15 = vmul.f32 1.442695, %v1164_v14 }
 0x761   : > { %v1173_v16 = vpop.permute.xlu0 %1172 }
 0x762   : > { %1578 = vpow2.f32 %v1165_v15  ;;  %1536 = vmatpush3.msra.mxu0 %v1173_v16 }
 0x76f   : > { %v1579_v17 = vpop.eup %1578 }
 0x770   : > { %v1167_v18 = vsel %vm367_vm2, %v1579_v17, 0.0 }
 0x771   : > { %1168 = vadd.xlane.f32.xlu1 %v1167_v18 }
 0x78d   : > { %v1077_v19 = vpop.f32.mrf.mxu0 }
 0x78e   : > { %v1081_v20 = vadd.f32 %v1077_v19, %v839_v50 }
 0x78f   : > { %v1529_v21 = vpop.f32.mrf.mxu0 }
 0x7fa   : > { %v1169_v22 = vpop.xlane.xlu1 %1168 }
 0x7fb   : > { %1580 = vrcp.f32 %v1169_v22 }
 0x808   : > { %v1581_v8 = vpop.eup %1580 }
 0x809   : > { %v1171_v23 = vmul.f32 %v1581_v8, %v1579_v17 }
 0x80b   : > { %1538 = vmatmul.mubr.msk.f32.vlgmr.msra.gmra.mxu0 %vm367_vm2, %v1171_v23 }
 0x8cb   : > { %v1244_v24 = vpop.f32.mrf.mxu0 }
 0x8cc   : > { %1543 = vmatmul.mubr.msk.f32.vlgmr.msra.gmra.mxu1 %vm367_vm2, %v1244_v24 }
 0x8cd   : > { %v1539_v25 = vpop.f32.mrf.mxu0 }
 0x98c   : > { %v1317_v26 = vpop.f32.mrf.mxu1 }
 0x98d   : > { %v1321_v27 = vadd.f32 %v1317_v26, %v1081_v20 }
 0x98e   : > { %v1544_v28 = vpop.f32.mrf.mxu1 }
 0x98f   : > { %v1322_v30 = vadd.f32 %v1321_v27, %v1681_v5  ;;  %v1441_v5 = vld [vmem:[%s1798_s5] ss:$0 sm:$0xff] }
 0x991   : > { %v1330_v31 = vadd.f32 %v1440_v29, %v1322_v30 }
 0x993   : > { %v1333_v32 = vsel %vm286_vm1, %v1330_v31, 0.0 }
 0x994   : > { %1334 = vadd.xlane.f32.xlu1 %v1333_v32 }
 0xa1d   : > { %v1335_v33 = vpop.xlane.xlu1 %1334 }
 0xa1e   : > { %v1337_v34 = vmul.f32 0.03125, %v1335_v33 }
 0xa20   : > { %v1338_v35 = vsub.f32 %v1330_v31, %v1337_v34 }
 0xa22   : > { %v1339_v36 = vmul.f32 %v1338_v35, %v1338_v35 }
 0xa24   : > { %v1340_v37 = vsel %vm286_vm1, %v1339_v36, 0.0 }
 0xa25   : > { %1341 = vadd.xlane.f32.xlu1 %v1340_v37 }
 0xaae   : > { %v1342_v38 = vpop.xlane.xlu1 %1341 }
 0xaaf   : > { %v1343_v39 = vmul.f32 0.03125, %v1342_v38 }
 0xab1   : > { %v1344_v40 = vadd.f32 1e-05, %v1343_v39 }
 0xab3   : > { %1582 = vrsqrt.f32 %v1344_v40 }
 0xac0   : > { %v1583_v41 = vpop.eup %1582 }
 0xac1   : > { %v1346_v42 = vmul.f32 %v1583_v41, %v1338_v35 }
 0xac3   : > { %v1353_v44 = vmul.f32 %v1441_v5, %v1346_v42 }
 0xac5   : > { %v1360_v45 = vadd.f32 %v1442_v43, %v1353_v44 }
 0xac7   : > { %1361 = vst.msk [vmem:[%s273_s26] sm:$0xff] %vm286_vm1, %v1360_v45 }
 0xac8 PF: > { %s17_s24 = sadd.s32 1, %s1590_s24  }
 0xac9   : > { %p14_p4 = scmp.ge.s32.totalorder %s17_s24, 4  }
 0xacb   :  { %16 = sbr.rel (!%p14_p4) target bundleno = 1 (0x1), region = 78 }

// kernel: decision_transformer_forward.21
= control target key start
LH: loop header
LB: loop body
LE: loop exit
PB: predicated region body
PF: predicated region fallthrough
CT: control target
= control target key end

     0   :  { %s1865_s13 = smov 0   ;;  %s2038_s0 = inlined_call_operand.vmem [shape: f32[16,32], index: 0, kind: input, shape index: {}]   ;;  %s2039_s1 = inlined_call_operand.vmem [shape: f32[16,32], index: 1, kind: input, shape index: {}]   ;;  %s2040_s2 = inlined_call_operand.vmem [shape: f32[32,32], index: 2, kind: input, shape index: {}]   ;;  %s2041_s3 = inlined_call_operand.vmem [shape: f32[1,32], index: 3, kind: input, shape index: {}]   ;;  %s2042_s4 = inlined_call_operand.vmem [shape: f32[32,64], index: 4, kind: input, shape index: {}]   ;;  %s2043_s5 = inlined_call_operand.vmem [shape: f32[1,64], index: 5, kind: input, shape index: {}]   ;;  %s2044_s6 = inlined_call_operand.vmem [shape: f32[32,32], index: 6, kind: input, shape index: {}]   ;;  %s2045_s7 = inlined_call_operand.vmem [shape: f32[1,32], index: 7, kind: input, shape index: {}]   ;;  %s2046_s8 = inlined_call_operand.vmem [shape: f32[1,32], index: 8, kind: input, shape index: {}]   ;;  %s2047_s9 = inlined_call_operand.vmem [shape: f32[1,32], index: 9, kind: input, shape index: {}]   ;;  %s2048_s10 = inlined_call_operand.vmem [shape: f32[16,32], index: 10, kind: output, shape index: {}]  }
   0x1 LB: > { %s1609_s14 = sadd.s32 4294967295, %s1799_s13   ;;  %p1613_p0 = scmp.ge.s32.totalorder %s1799_s13, 1  ;;  %s1799_s13 = sphi %s1865_s13, %s20_s13  }
   0x2   : > { %p320_p1 = scmp.lt.s32.totalorder %s1799_s13, 3 }
   0x4   : > { %p321_p2 = pnand %p1613_p0, %p320_p1 }
   0x5   : > { %p360_p3 = scmp.lt.s32.totalorder (!%p321_p2), %s1609_s14, 1  ;;  %s1803_s23 = smov (!%p321_p2), 120  }
   0x6   : > { %324 = sbr.rel (%p321_p2) target bundleno = 2757 (0xac5), region = 60  ;;  %s1804_s24 = smov (!%p321_p2), 96  }
   0x7   : > { %s1805_s25 = smov (!%p321_p2), 88   ;;  %s1806_s26 = smov (!%p321_p2), 112  }
   0x8   : > { %s1809_s17 = smov (!%p321_p2), 72  }
   0xb   : > { %v462_v0 = vld [vmem:[%s2042_s4 + $0x18] sm:$0xff]  ;;  %v1801_v2 = vmov 0.0   ;;  %v461_v3 = vld [vmem:[%s2042_s4 + $0x10] sm:$0xff]  ;;  %s2050_s14 = smov (!%p360_p3, %s1609_s14), 1  ;;  %v460_v5 = vld [vmem:[%s2042_s4 + $0x8] sm:$0xff]  ;;  %vm385_vm0 = vcmask 261120  }
   0xc   : > { %v377_v1 = vld [vmem:[%s2040_s2 + $0x18] sm:$0xff]  ;;  %1687 = vmatprep.subr.mxu1 %v1801_v2  ;;  %1676 = vmatprep.subr.mxu0 %v1801_v2  ;;  %v376_v4 = vld [vmem:[%s2040_s2 + $0x10] sm:$0xff]  ;;  %v375_v6 = vld [vmem:[%s2040_s2 + $0x8] sm:$0xff]  ;;  %s1895_s27 = sshll.u32 %s2050_s14, 3  ;;  %vm1802_vm1 = vmmov 0   ;;  %vm547_vm2 = vcmask 64512  }
   0xd   : > { %1688 = vmatpush3.msra.mxu1 %v462_v0  ;;  %1677 = vmatpush3.msra.mxu0 %v377_v1  ;;  %v459_v7 = vld [vmem:[%s2042_s4] sm:$0xff]  ;;  %s367_s12 = scalar_lea.vmem %s2039_s1, %s1895_s27  ;;  %s363_s18 = scalar_lea.vmem %s2038_s0, %s1895_s27  ;;  %v544_v43 = vld [vmem:[%s2044_s6 + $0x8] sm:$0xff] }
   0xe   : > { %1689 = vmatprep.subr.mxu1 %v1801_v2  ;;  %1678 = vmatprep.subr.mxu0 %v1801_v2  ;;  %v373_v8 = vld [vmem:[%s367_s12] sm:$0xff]  ;;  %s1807_s12 = smov 80   ;;  %s1808_s14 = smov 104  }
   0xf   : > { %1690 = vmatpush3.msra.mxu1 %v461_v3  ;;  %1679 = vmatpush3.msra.mxu0 %v376_v4  ;;  %v374_v9 = vld [vmem:[%s2040_s2] sm:$0xff]  ;;  %s371_s29 = scalar_lea.vmem %s2048_s10, %s1895_s27 }
  0x10   : > { %1691 = vmatprep.subr.mxu1 %v1801_v2  ;;  %1680 = vmatprep.subr.mxu0 %v1801_v2  ;;  %v1917_v10 = vld [vmem:[%s363_s18] sm:$0xff] }
  0x11   : > { %1692 = vmatpush3.msra.mxu1 %v460_v5  ;;  %1681 = vmatpush3.msra.mxu0 %v375_v6  ;;  %v1619_v11 = vld [vmem:[%s2043_s5] ss:$0 sm:$0xff] }
  0x12   : > { %1693 = vmatprep.subr.mxu1 %v1801_v2  ;;  %1695 = vmatprep.mubr.msk.f32.mxu1 %vm1802_vm1, %v1801_v2  ;;  %v1617_v13 = vld [vmem:[%s2041_s3] ss:$0 sm:$0xff] }
  0x13   : > { %1694 = vmatpush3.msra.mxu1 %v459_v7  ;;  %1682 = vmatprep.subr.mxu0 %v1801_v2  ;;  %v543_v48 = vld [vmem:[%s2044_s6] sm:$0xff] }
  0x14   : > { %1696 = vmatmul.mubr.msk.f32.vlgmr.msra.gmra.mxu1 %vm385_vm0, %v373_v8  ;;  %1683 = vmatpush3.msra.mxu0 %v374_v9 }
  0x15   : > { %1684 = vmatprep.mubr.msk.f32.mxu0 %vm1802_vm1, %v1801_v2  ;;  %1698 = vmatprep.subr.mxu0 %v1801_v2 }
  0x16   : > { %1685 = vmatmul.mubr.msk.f32.vlgmr.msra.gmra.mxu0 %vm385_vm0, %v1917_v10  ;;  %1703 = vmatprep.subr.mxu1 %v1801_v2 }
  0x17   : > { %1700 = vmatprep.mubr.msk.f32.mxu0 %vm1802_vm1, %v1801_v2  ;;  %1705 = vmatprep.mubr.msk.f32.mxu1 %vm1802_vm1, %v1801_v2 }
  0xd4   : > { %v539_v12 = vpop.f32.mrf.mxu1 }
  0xd5   : > { %v1936_v14 = vadd.f32 %v1619_v11, %v539_v12  ;;  %v545_v12 = vld [vmem:[%s2044_s6 + $0x10] sm:$0xff] }
  0xd6   : > { %v455_v15 = vpop.f32.mrf.mxu0  ;;  %v1697_v16 = vpop.f32.mrf.mxu1 }
  0xd7   : > { %v1938_v17 = vadd.f32 %v1617_v13, %v455_v15  ;;  %714 = vrot.lane.b32.xlu0 %v1936_v14, %s1803_s23  ;;  %1699 = vmatpush3.xpose.msk.msra.mxu0 %vm547_vm2, %v1936_v14 }
  0xd8   : > { %v1686_v18 = vpop.f32.mrf.mxu0  ;;  %1708 = vmatprep.subr.mxu0 %v1801_v2 }
  0xda   : > { %1701 = vmatmul.mubr.msk.f32.vlgmr.msra.gmra.mxu0 %vm547_vm2, %v1938_v17 }
  0xdb   : > { %712 = vrot.lane.b32.xlu0 %v1938_v17, %s1803_s23  ;;  %1710 = vmatprep.mubr.msk.f32.mxu0 %vm1802_vm1, %v1801_v2 }
 0x149   : > { %v715_v19 = vpop.permute.xlu0 %714 }
 0x14a   : > { %1709 = vmatpush3.xpose.msk.msra.mxu0 %vm547_vm2, %v715_v19 }
 0x14b   : > { %1718 = vmatprep.subr.mxu0 %v1801_v2 }
 0x14d   : > { %v713_v20 = vpop.permute.xlu0 %712 }
 0x14e   : > { %1711 = vmatmul.mubr.msk.f32.vlgmr.msra.gmra.mxu0 %vm547_vm2, %v713_v20 }
 0x14f   : > { %1720 = vmatprep.mubr.msk.f32.mxu0 %vm1802_vm1, %v1801_v2  ;;  %1719 = vmatpush3.msra.mxu0 %v544_v43 }
 0x150   : > { %1728 = vmatprep.subr.mxu0 %v1801_v2 }
 0x19a   : > { %v620_v21 = vpop.f32.mrf.mxu0 }
 0x19b   : > { %v624_v22 = vmul.f32 0.35355338, %v620_v21 }
 0x19c   : > { %v1702_v23 = vpop.f32.mrf.mxu0 }
 0x19d   : > { %v625_v24 = vsel %vm547_vm2, %v624_v22, -inf }
 0x19e   : > { %626 = vmax.xlane.f32.xlu1 %v625_v24 }
 0x20e   : > { %v786_v25 = vpop.f32.mrf.mxu0 }
 0x20f   : > { %v790_v26 = vmul.f32 0.35355338, %v786_v25 }
 0x210   : > { %v1712_v27 = vpop.f32.mrf.mxu0 }
 0x211   : > { %v791_v28 = vsel %vm547_vm2, %v790_v26, -inf }
 0x212   : > { %792 = vmax.xlane.f32.xlu1 %v791_v28 }
 0x223   : > { %636 = vrot.lane.b32.xlu1 %v1936_v14, %s1804_s24 }
 0x227   : > { %v627_v29 = vpop.xlane.xlu1 %626 }
 0x228   : > { %v628_v30 = vsub.f32 %v624_v22, %v627_v29 }
 0x22a   : > { %v629_v31 = vmul.f32 1.442695, %v628_v30 }
 0x22c   : > { %1775 = vpow2.f32 %v629_v31 }
 0x239   : > { %v1776_v32 = vpop.eup %1775 }
 0x23a   : > { %v631_v33 = vsel %vm547_vm2, %v1776_v32, 0.0 }
 0x23b   : > { %632 = vadd.xlane.f32.xlu0 %v631_v33 }
 0x29b   : > { %v793_v34 = vpop.xlane.xlu1 %792 }
 0x29c   : > { %v794_v35 = vsub.f32 %v790_v26, %v793_v34 }
 0x29e   : > { %v795_v36 = vmul.f32 1.442695, %v794_v35 }
 0x29f   : > { %v637_v37 = vpop.permute.xlu1 %636 }
 0x2a0   : > { %1777 = vpow2.f32 %v795_v36  ;;  %1704 = vmatpush3.msra.mxu1 %v637_v37  ;;  %v1637_v37 = vld [vmem:[%s2045_s7] ss:$0 sm:$0xff] }
 0x2a1   : > { %1713 = vmatprep.subr.mxu1 %v1801_v2 }
 0x2ad   : > { %v1778_v38 = vpop.eup %1777 }
 0x2ae   : > { %v797_v39 = vsel %vm547_vm2, %v1778_v38, 0.0 }
 0x2af   : > { %798 = vadd.xlane.f32.xlu1 %v797_v39 }
 0x2c0   : > { %802 = vrot.lane.b32.xlu1 %v1936_v14, %s1805_s25 }
 0x2c4   : > { %v633_v40 = vpop.xlane.xlu0 %632  ;;  %1026 = vrot.lane.b32.xlu1 %v1936_v14, %s1806_s26 }
 0x2c5   : > { %1779 = vrcp.f32 %v633_v40 }
 0x2c8   : > { %1024 = vrot.lane.b32.xlu1 %v1938_v17, %s1806_s26 }
 0x2d2   : > { %v1780_v41 = vpop.eup %1779 }
 0x2d3   : > { %v635_v42 = vmul.f32 %v1780_v41, %v1776_v32 }
 0x2d5   : > { %1706 = vmatmul.mubr.msk.f32.vlgmr.msra.gmra.mxu1 %vm547_vm2, %v635_v42 }
 0x2d6   : > { %1715 = vmatprep.mubr.msk.f32.mxu1 %vm1802_vm1, %v1801_v2 }
 0x338   : > { %v799_v44 = vpop.xlane.xlu1 %798 }
 0x339   : > { %1781 = vrcp.f32 %v799_v44 }
 0x33c   : > { %v803_v45 = vpop.permute.xlu1 %802 }
 0x33d   : > { %1714 = vmatpush3.msra.mxu1 %v803_v45 }
 0x33e   : > { %1723 = vmatprep.subr.mxu1 %v1801_v2 }
 0x340   : > { %v1027_v51 = vpop.permute.xlu1 %1026 }
 0x344   : > { %v1025_v54 = vpop.permute.xlu1 %1024 }
 0x346   : > { %v1782_v46 = vpop.eup %1781 }
 0x347   : > { %v801_v47 = vmul.f32 %v1782_v46, %v1778_v38 }
 0x349   : > { %1716 = vmatmul.mubr.msk.f32.vlgmr.msra.gmra.mxu1 %vm547_vm2, %v801_v47 }
 0x34a   : > { %1724 = vmatpush3.msra.mxu1 %v543_v48  ;;  %1725 = vmatprep.mubr.msk.f32.mxu1 %vm1802_vm1, %v1801_v2 }
 0x34b   : > { %1733 = vmatprep.subr.mxu1 %v1801_v2 }
 0x395   : > { %v708_v49 = vpop.f32.mrf.mxu1 }
 0x396   : > { %1726 = vmatmul.mubr.msk.f32.vlgmr.msra.gmra.mxu1 %vm547_vm2, %v708_v49 }
 0x397   : > { %v1707_v50 = vpop.f32.mrf.mxu1  ;;  %1735 = vmatprep.mubr.msk.f32.mxu1 %vm1802_vm1, %v1801_v2 }
 0x409   : > { %v874_v52 = vpop.f32.mrf.mxu1 }
 0x40a   : > { %1721 = vmatmul.mubr.msk.f32.vlgmr.msra.gmra.mxu0 %vm547_vm2, %v874_v52 }
 0x40b   : > { %1729 = vmatpush3.xpose.msk.msra.mxu0 %vm547_vm2, %v1027_v51  ;;  %v1717_v53 = vpop.f32.mrf.mxu1  ;;  %1730 = vmatprep.mubr.msk.f32.mxu0 %vm1802_vm1, %v1801_v2  ;;  %v1639_v51 = vld [vmem:[%s2047_s9] ss:$0 sm:$0xff] }
 0x40c   : > { %1738 = vmatprep.subr.mxu0 %v1801_v2 }
 0x40e   : > { %1731 = vmatmul.mubr.msk.f32.vlgmr.msra.gmra.mxu0 %vm547_vm2, %v1025_v54 }
 0x40f   : > { %1740 = vmatprep.mubr.msk.f32.mxu0 %vm1802_vm1, %v1801_v2  ;;  %1739 = vmatpush3.msra.mxu0 %v545_v12 }
 0x410   : > { %1748 = vmatprep.subr.mxu0 %v1801_v2 }
 0x456   : > { %v1020_v55 = vpop.f32.mrf.mxu1 }
 0x458   : > { %v1727_v56 = vpop.f32.mrf.mxu1 }
 0x4ca   : > { %v947_v57 = vpop.f32.mrf.mxu0 }
 0x4cb   : > { %v1021_v25 = vadd.f32 %v1020_v55, %v947_v57 }
 0x4cc   : > { %v1722_v58 = vpop.f32.mrf.mxu0 }
 0x4ce   : > { %v1098_v59 = vpop.f32.mrf.mxu0 }
 0x4cf   : > { %v1102_v60 = vmul.f32 0.35355338, %v1098_v59 }
 0x4d0   : > { %v1732_v61 = vpop.f32.mrf.mxu0 }
 0x4d1   : > { %v1103_v62 = vsel %vm547_vm2, %v1102_v60, -inf }
 0x4d2   : > { %1104 = vmax.xlane.f32.xlu0 %v1103_v62 }
 0x4e8   : > { %1114 = vrot.lane.b32.xlu0 %v1936_v14, %s1807_s12 }
 0x4ec   : > { %1266 = vrot.lane.b32.xlu0 %v1936_v14, %s1808_s14 }
 0x4f0   : > { %1264 = vrot.lane.b32.xlu0 %v1938_v17, %s1808_s14 }
 0x55b   : > { %v1105_v63 = vpop.xlane.xlu0 %1104 }
 0x55c   : > { %v1106_v0 = vsub.f32 %v1102_v60, %v1105_v63 }
 0x55e   : > { %v1107_v1 = vmul.f32 1.442695, %v1106_v0 }
 0x55f   : > { %v1115_v3 = vpop.permute.xlu0 %1114 }
 0x560   : > { %1783 = vpow2.f32 %v1107_v1  ;;  %1734 = vmatpush3.msra.mxu1 %v1115_v3 }
 0x561   : > { %1743 = vmatprep.subr.mxu1 %v1801_v2 }
 0x563   : > { %v1267_v8 = vpop.permute.xlu0 %1266 }
 0x567   : > { %v1265_v11 = vpop.permute.xlu0 %1264 }
 0x56d   : > { %v1784_v4 = vpop.eup %1783 }
 0x56e   : > { %v1109_v5 = vsel %vm547_vm2, %v1784_v4, 0.0 }
 0x56f   : > { %1110 = vadd.xlane.f32.xlu1 %v1109_v5 }
 0x5f8   : > { %v1111_v6 = vpop.xlane.xlu1 %1110 }
 0x5f9   : > { %1785 = vrcp.f32 %v1111_v6 }
 0x606   : > { %v1786_v7 = vpop.eup %1785 }
 0x607   : > { %v1113_v9 = vmul.f32 %v1786_v7, %v1784_v4 }
 0x609   : > { %1736 = vmatmul.mubr.msk.f32.vlgmr.msra.gmra.mxu1 %vm547_vm2, %v1113_v9 }
 0x60a   : > { %1744 = vmatpush3.xpose.msk.msra.mxu1 %vm547_vm2, %v1267_v8  ;;  %1745 = vmatprep.mubr.msk.f32.mxu1 %vm1802_vm1, %v1801_v2 }
 0x60b   : > { %1753 = vmatprep.subr.mxu1 %v1801_v2 }
 0x60d   : > { %1746 = vmatmul.mubr.msk.f32.vlgmr.msra.gmra.mxu1 %vm547_vm2, %v1265_v11 }
 0x60e   : > { %1755 = vmatprep.mubr.msk.f32.mxu1 %vm1802_vm1, %v1801_v2 }
 0x6c9   : > { %v1186_v13 = vpop.f32.mrf.mxu1 }
 0x6ca   : > { %1741 = vmatmul.mubr.msk.f32.vlgmr.msra.gmra.mxu0 %vm547_vm2, %v1186_v13 }
 0x6cb   : > { %v1737_v15 = vpop.f32.mrf.mxu1  ;;  %1750 = vmatprep.mubr.msk.f32.mxu0 %vm1802_vm1, %v1801_v2  ;;  %v546_v2 = vld [vmem:[%s2044_s6 + $0x18] sm:$0xff] }
 0x6cc   : > { %1754 = vmatpush3.msra.mxu1 %v546_v2 }
 0x6cd   : > { %v1338_v16 = vpop.f32.mrf.mxu1 }
 0x6ce   : > { %v1342_v17 = vmul.f32 0.35355338, %v1338_v16 }
 0x6cf   : > { %v1747_v18 = vpop.f32.mrf.mxu1 }
 0x6d0   : > { %v1343_v19 = vsel %vm547_vm2, %v1342_v17, -inf }
 0x6d1   : > { %1344 = vmax.xlane.f32.xlu0 %v1343_v19 }
 0x75a   : > { %v1345_v20 = vpop.xlane.xlu0 %1344 }
 0x75b   : > { %v1346_v21 = vsub.f32 %v1342_v17, %v1345_v20 }
 0x75d   : > { %v1347_v22 = vmul.f32 1.442695, %v1346_v21 }
 0x75f   : > { %1787 = vpow2.f32 %v1347_v22 }
 0x76c   : > { %v1788_v23 = vpop.eup %1787 }
 0x76d   : > { %v1349_v24 = vsel %vm547_vm2, %v1788_v23, 0.0 }
 0x76e   : > { %1350 = vadd.xlane.f32.xlu1 %v1349_v24 }
 0x77f   : > { %1354 = vrot.lane.b32.xlu1 %v1936_v14, %s1809_s17 }
 0x78a   : > { %v1259_v26 = vpop.f32.mrf.mxu0 }
 0x78b   : > { %v1263_v27 = vadd.f32 %v1259_v26, %v1021_v25 }
 0x78c   : > { %v1742_v28 = vpop.f32.mrf.mxu0 }
 0x7f7   : > { %v1351_v29 = vpop.xlane.xlu1 %1350 }
 0x7f8   : > { %1789 = vrcp.f32 %v1351_v29 }
 0x7fb   : > { %v1355_v30 = vpop.permute.xlu1 %1354 }
 0x7fc   : > { %1749 = vmatpush3.msra.mxu0 %v1355_v30 }
 0x805   : > { %v1790_v31 = vpop.eup %1789 }
 0x806   : > { %v1353_v32 = vmul.f32 %v1790_v31, %v1788_v23 }
 0x808   : > { %1751 = vmatmul.mubr.msk.f32.vlgmr.msra.gmra.mxu0 %vm547_vm2, %v1353_v32 }
 0x8c8   : > { %v1426_v33 = vpop.f32.mrf.mxu0 }
 0x8c9   : > { %1756 = vmatmul.mubr.msk.f32.vlgmr.msra.gmra.mxu1 %vm547_vm2, %v1426_v33 }
 0x8ca   : > { %v1752_v14 = vpop.f32.mrf.mxu0 }
 0x989   : > { %v1499_v34 = vpop.f32.mrf.mxu1 }
 0x98a   : > { %v1503_v35 = vadd.f32 %v1499_v34, %v1263_v27 }
 0x98b   : > { %v1757_v36 = vpop.f32.mrf.mxu1 }
 0x98c   : > { %v1504_v38 = vadd.f32 %v1503_v35, %v1917_v10  ;;  %v1638_v10 = vld [vmem:[%s2046_s8] ss:$0 sm:$0xff] }
 0x98e   : > { %v1512_v39 = vadd.f32 %v1637_v37, %v1504_v38 }
 0x990   : > { %v1515_v40 = vsel %vm385_vm0, %v1512_v39, 0.0 }
 0x991   : > { %1516 = vadd.xlane.f32.xlu1 %v1515_v40 }
 0xa1a   : > { %v1517_v41 = vpop.xlane.xlu1 %1516 }
 0xa1b   : > { %v1519_v42 = vmul.f32 0.03125, %v1517_v41 }
 0xa1d   : > { %v1520_v43 = vsub.f32 %v1512_v39, %v1519_v42 }
 0xa1f   : > { %v1521_v44 = vmul.f32 %v1520_v43, %v1520_v43 }
 0xa21   : > { %v1522_v45 = vsel %vm385_vm0, %v1521_v44, 0.0 }
 0xa22   : > { %1523 = vadd.xlane.f32.xlu0 %v1522_v45 }
 0xaab   : > { %v1524_v46 = vpop.xlane.xlu0 %1523 }
 0xaac   : > { %v1525_v47 = vmul.f32 0.03125, %v1524_v46 }
 0xaae   : > { %v1526_v48 = vadd.f32 1e-05, %v1525_v47 }
 0xab0   : > { %1791 = vrsqrt.f32 %v1526_v48 }
 0xabd   : > { %v1792_v49 = vpop.eup %1791 }
 0xabe   : > { %v1528_v50 = vmul.f32 %v1792_v49, %v1520_v43 }
 0xac0   : > { %v1535_v52 = vmul.f32 %v1638_v10, %v1528_v50 }
 0xac2   : > { %v1542_v53 = vadd.f32 %v1639_v51, %v1535_v52 }
 0xac4   : > { %1543 = vst.msk [vmem:[%s371_s29] sm:$0xff] %vm385_vm0, %v1542_v53 }
 0xac5 PF: > { %s20_s13 = sadd.s32 1, %s1799_s13  }
 0xac6   : > { %p17_p4 = scmp.ge.s32.totalorder %s20_s13, 4  }
 0xac8   :  { %19 = sbr.rel (!%p17_p4) target bundleno = 1 (0x1), region = 93 }

</bundles_post_ra>
